<compile_context>
chip_gen: v5e
topology: v5e:2x2
jax: 0.10.0
libtpu: 0.0.40
codegen_flags: <defaults>
</compile_context>

<pallas_src>
import jax
import jax.numpy as jnp
from jax.experimental import pallas as pl
from jax.experimental.pallas import tpu as pltpu

_BIAS_SUBLANES = 8  # bias rows stored 8-sublane padded (exactly one sublane tile)


# ----------------------------------------------------------------------------
# Pallas kernel: one grid step == one timestep of the tail window.
# ----------------------------------------------------------------------------
def _tail_decode_kernel(v_ref, j_ref,            # (1, B_pad) int32 index rows (VMEM)
                        hu_ref, hi_ref,          # (d, n_users)/(d, n_items) bf16 step tables
                        bu_ref, bi_ref,          # (8, n_users)/(8, n_items) f32, row 0 = bias
                        init_u_ref, init_i_ref,  # (d, n_users)/(d, n_items) f32 merge seed
                        mu_ref,                  # (T_eff,) f32 in SMEM
                        out_ref,                 # (1, B_pad) f32 lane-dense score row
                        acc_u_ref, acc_i_ref):   # persistent VMEM f32 accumulators
    t = pl.program_id(0)

    @pl.when(t == 0)
    def _init():
        # Accumulators are seeded with the initial memory state m (zeros if None).
        acc_u_ref[...] = init_u_ref[...]
        acc_i_ref[...] = init_i_ref[...]

    # merge_u / merge_i: running prefix sum of the per-timestep tables
    # (bf16 stream cast to f32 on the VPU; accumulation stays f32).
    acc_u_ref[...] += hu_ref[...].astype(jnp.float32)
    acc_i_ref[...] += hi_ref[...].astype(jnp.float32)

    n_users = acc_u_ref.shape[1]
    n_items = acc_i_ref.shape[1]
    b_pad = v_ref.shape[-1]

    # ---------------- user path (only one (n_rows, B_pad) one-hot live) -----
    v_row = v_ref[...]                                     # (1, B_pad) int32
    onehot_u = (jax.lax.broadcasted_iota(jnp.int32, (n_users, b_pad), 0)
                == v_row).astype(jnp.float32)              # (n_users, B_pad)
    # MXU one-hot gather: column k is the merged embedding of user v[k].
    # HIGHEST precision => exact f32 row selection.
    gu = jnp.dot(acc_u_ref[...], onehot_u,
                 preferred_element_type=jnp.float32,
                 precision=jax.lax.Precision.HIGHEST)      # (d, B_pad)
    # Bias gather rides the same one-hot on the MXU (row 0 holds the bias).
    bias_u = jnp.dot(bu_ref[...], onehot_u,
                     preferred_element_type=jnp.float32,
                     precision=jax.lax.Precision.HIGHEST)[0:1, :]   # (1, B_pad)

    # ---------------- item path ---------------------------------------------
    j_row = j_ref[...]                                     # (1, B_pad) int32
    onehot_i = (jax.lax.broadcasted_iota(jnp.int32, (n_items, b_pad), 0)
                == j_row).astype(jnp.float32)              # (n_items, B_pad)
    gi = jnp.dot(acc_i_ref[...], onehot_i,
                 preferred_element_type=jnp.float32,
                 precision=jax.lax.Precision.HIGHEST)      # (d, B_pad)
    bias_i = jnp.dot(bi_ref[...], onehot_i,
                     preferred_element_type=jnp.float32,
                     precision=jax.lax.Precision.HIGHEST)[0:1, :]   # (1, B_pad)

    # Paired dot products: VPU multiply + single sublane reduce (XLU has slack
    # now that the bias gathers are on the MXU) -> lane-dense row.
    dots = jnp.sum(gu * gi, axis=0, keepdims=True)         # (1, B_pad)

    out_ref[...] = dots + bias_u + bias_i + mu_ref[t]      # single unmasked store


# ----------------------------------------------------------------------------
# pallas_call wrapper
# ----------------------------------------------------------------------------
def _fused_tail_decode(hu_stack_T, hi_stack_T, bu_stack, bi_stack, mus_sl,
                       init_u, init_i, v_pad, j_pad, start):
    """Run the fused tail decode.  Returns (T_eff, B_pad) f32 scores."""
    t_eff = v_pad.shape[0]
    _, d, n_users = hu_stack_T.shape
    n_items = hi_stack_T.shape[-1]
    b_pad = v_pad.shape[-1]

    grid_spec = pltpu.PrefetchScalarGridSpec(
        num_scalar_prefetch=0,
        grid=(t_eff,),
        in_specs=[
            pl.BlockSpec((None, 1, b_pad), lambda t: (t, 0, 0)),            # v indices
            pl.BlockSpec((None, 1, b_pad), lambda t: (t, 0, 0)),            # j indices
            # Tail-window selection via the static `start` offset: the cached
            # full stacks are passed untouched (no wrapper-side slice/copy).
            pl.BlockSpec((None, d, n_users), lambda t: (t + start, 0, 0)),  # h_u^T
            pl.BlockSpec((None, d, n_items), lambda t: (t + start, 0, 0)),  # h_i^T
            pl.BlockSpec((None, _BIAS_SUBLANES, n_users),
                         lambda t: (t + start, 0, 0)),                      # b_u rows
            pl.BlockSpec((None, _BIAS_SUBLANES, n_items),
                         lambda t: (t + start, 0, 0)),                      # b_i rows
            pl.BlockSpec((d, n_users), lambda t: (0, 0)),                   # init m_u^T
            pl.BlockSpec((d, n_items), lambda t: (0, 0)),                   # init m_i^T
            pl.BlockSpec(memory_space=pltpu.MemorySpace.SMEM),              # mus
        ],
        out_specs=pl.BlockSpec((None, 1, b_pad), lambda t: (t, 0, 0)),
        scratch_shapes=[
            pltpu.VMEM((d, n_users), jnp.float32),   # accumulated user table
            pltpu.VMEM((d, n_items), jnp.float32),   # accumulated item table
        ],
    )

    out = pl.pallas_call(
        _tail_decode_kernel,
        out_shape=jax.ShapeDtypeStruct((t_eff, 1, b_pad), jnp.float32),
        grid_spec=grid_spec,
        compiler_params=pltpu.CompilerParams(
            # The timestep axis carries the running-sum accumulator => sequential.
            # A batch-tile axis (large batches) would be the "parallel" one
            # (v7x megacore).  For large tables set vmem_limit_bytes here.
            dimension_semantics=("arbitrary",),
        ),
    )(v_pad, j_pad, hu_stack_T, hi_stack_T, bu_stack, bi_stack,
      init_u, init_i, mus_sl)
    return out.reshape(t_eff, b_pad)


# ----------------------------------------------------------------------------
# One-time parameter preparation (analogue of nn.Module.__init__ caching).
# ----------------------------------------------------------------------------
def prepare_params(hh_u, hh_i, bb_u, bb_i, mus, *, table_dtype=jnp.bfloat16):
    """Stack/lay out the parameters once; reuse the result across forward calls.

    Tables -> (S, d, n_rows) bf16 (batch on lanes, half the HBM stream);
    biases -> (S, 8, n_rows) f32 lane-major rows (row 0 = bias).
    """
    def _stack_T(tables):
        return jnp.stack([jnp.asarray(h).T.astype(table_dtype) for h in tables])

    def _stack_bias(biases):
        rows = jnp.stack([jnp.asarray(b, jnp.float32).reshape(1, -1)
                          for b in biases])                       # (S, 1, n_rows)
        return jnp.pad(rows, ((0, 0), (0, _BIAS_SUBLANES - 1), (0, 0)))

    return {
        "hh_u": list(hh_u), "hh_i": list(hh_i),        # kept for the detach branch
        "hu_stack_T": _stack_T(hh_u),                  # (S, d, n_users) bf16
        "hi_stack_T": _stack_T(hh_i),                  # (S, d, n_items) bf16
        "bu_stack": _stack_bias(bb_u),                 # (S, 8, n_users) f32
        "bi_stack": _stack_bias(bb_i),                 # (S, 8, n_items) f32
        "mus": jnp.asarray(list(mus), jnp.float32),    # (S,)
    }


# ----------------------------------------------------------------------------
# TemporalBiasedMF.forward
# ----------------------------------------------------------------------------
def temporal_biased_mf_forward(params, uu, ii, rr, vv, jj, m, s=None,
                               detach=False, *, T):
    """Mirrors TemporalBiasedMF.forward(uu, ii, rr, vv, jj, m, s, detach).

    `params` is either the dict from `prepare_params` (preferred: prepare once
    and cache) or the raw (hh_u, hh_i, bb_u, bb_i, mus) tuple of per-step
    lists (prepared on the fly — avoid in hot loops).
    """
    # TODO(synk): BiasedMF.decode source was not provided; the standard biased-MF
    # decode <g_u[v], g_i[j]> + b_u[v] + b_i[j] + mu is implemented and `s` is ignored.
    prepared = params if isinstance(params, dict) else prepare_params(*params)
    m_u, m_i = (None, None) if m is None else m

    hu_stack_T = prepared["hu_stack_T"]
    hi_stack_T = prepared["hi_stack_T"]
    n_steps, d, n_users = hu_stack_T.shape
    n_items = hi_stack_T.shape[-1]

    if detach:
        if len(rr) < T:
            return None
        idx = len(rr) - T
        g_u = jnp.asarray(prepared["hh_u"][idx])[None]   # (1, n_users, d) == unsqueeze(0)
        g_i = jnp.asarray(prepared["hh_i"][idx])[None]
        if m_u is not None:
            g_u = g_u + m_u
        if m_i is not None:
            g_i = g_i + m_i
        return [jax.lax.stop_gradient(g_u), jax.lax.stop_gradient(g_i)]

    # deque(zip(vv, jj, hh_u, hh_i, bb_u, bb_i, mus), maxlen=T) -> static tail window.
    n_zip = min(len(vv), len(jj), n_steps)
    start = max(0, n_zip - T)
    t_eff = n_zip - start
    if t_eff == 0:
        return []

    vv_t = vv[start:n_zip]
    jj_t = jj[start:n_zip]

    # Initial merge state seeds the in-kernel accumulators (zeros when m is None),
    # so the cached table stacks never have to be touched.
    init_u = (jnp.zeros((d, n_users), jnp.float32) if m_u is None
              else jnp.asarray(m_u, jnp.float32).reshape(n_users, d).T)
    init_i = (jnp.zeros((d, n_items), jnp.float32) if m_i is None
              else jnp.asarray(m_i, jnp.float32).reshape(n_items, d).T)

    # Pad index vectors to a common lane-dense width (multiple of 128; use a
    # multiple of 256 on v6e/v7x when the batch is large to fill the 256-wide MXU).
    lens = [int(jnp.asarray(v).shape[0]) for v in vv_t]
    b_max = max(lens)
    b_pad = max(128, ((b_max + 127) // 128) * 128)

    def _pad_idx(x, n):
        return jnp.pad(jnp.asarray(x, jnp.int32), (0, b_pad - n))

    v_pad = jnp.stack([_pad_idx(v, n) for v, n in zip(vv_t, lens)]
                      ).reshape(t_eff, 1, b_pad)
    j_pad = jnp.stack([_pad_idx(j, n) for j, n in zip(jj_t, lens)]
                      ).reshape(t_eff, 1, b_pad)

    mus_sl = prepared["mus"][start:n_zip]

    scores = _fused_tail_decode(hu_stack_T, hi_stack_T,
                                prepared["bu_stack"], prepared["bi_stack"],
                                mus_sl, init_u, init_i, v_pad, j_pad, start)
    # Padded lanes compute real scores for row 0; slice them off.
    return [scores[t, :lens[t]] for t in range(t_eff)]


# ----------------------------------------------------------------------------
# Pure-JAX reference (for correctness checking)
# ----------------------------------------------------------------------------
def _biased_mf_decode_ref(g_u, g_i, b_u, b_i, mu, v, j, s=None):
    del s
    return jnp.sum(g_u[v] * g_i[j], axis=-1) + b_u[v] + b_i[j] + mu


def temporal_biased_mf_forward_ref(params, uu, ii, rr, vv, jj, m, s=None,
                                   detach=False, *, T):
    hh_u, hh_i, bb_u, bb_i, mus = params
    m_u, m_i = (None, None) if m is None else m
    tt = []
    for v, j, h_u, h_i, b_u, b_i, mu in list(zip(vv, jj, hh_u, hh_i,
                                                 bb_u, bb_i, mus))[-T:]:
        g_u = h_u if m_u is None else h_u + jnp.reshape(m_u, h_u.shape)
        m_u = g_u
        g_i = h_i if m_i is None else h_i + jnp.reshape(m_i, h_i.shape)
        m_i = g_i
        tt.append(_biased_mf_decode_ref(g_u, g_i, b_u, b_i, mu, v, j, s))
    return tt


# ----------------------------------------------------------------------------
# Demo / self-test
# ----------------------------------------------------------------------------
if __name__ == "__main__":
    n_users, n_items, d, T = 64, 80, 128, 3
    mus = [3.0, 3.1, 3.2, 3.3]            # 4 timesteps; tail window keeps the last 3
    batch = 16                            # interactions per timestep
    n_steps = len(mus)

    key = jax.random.PRNGKey(0)
    keys = jax.random.split(key, 6 * n_steps + 2)

    # Parameters matching the module __init__ shapes.  Biases are randomized
    # (module initializes them to zero) so the bias-gather path is exercised.
    hh_u = [0.001 * jax.random.normal(keys[t], (n_users, d), jnp.float32)
            for t in range(n_steps)]
    hh_i = [0.001 * jax.random.normal(keys[n_steps + t], (n_items, d), jnp.float32)
            for t in range(n_steps)]
    bb_u = [0.01 * jax.random.normal(keys[2 * n_steps + t], (n_users,), jnp.float32)
            for t in range(n_steps)]
    bb_i = [0.01 * jax.random.normal(keys[3 * n_steps + t], (n_items,), jnp.float32)
            for t in range(n_steps)]

    # Per-step interaction index lists vv (users) and jj (items).
    vv = [jax.random.randint(keys[4 * n_steps + t], (batch,), 0, n_users,
                             dtype=jnp.int32) for t in range(n_steps)]
    jj = [jax.random.randint(keys[5 * n_steps + t], (batch,), 0, n_items,
                             dtype=jnp.int32) for t in range(n_steps)]

    params_raw = (hh_u, hh_i, bb_u, bb_i, mus)
    prepared = prepare_params(hh_u, hh_i, bb_u, bb_i, mus)   # cache once
    uu = ii = rr = [None] * n_steps       # unused by the scoring path

    # --- scoring path, no memory state ---------------------------------------
    out = temporal_biased_mf_forward(prepared, uu, ii, rr, vv, jj, m=None, T=T)
    out = [jax.block_until_ready(o) for o in out]
    ref = temporal_biased_mf_forward_ref(params_raw, uu, ii, rr, vv, jj, m=None, T=T)
    assert len(out) == T
    for o, r in zip(out, ref):
        assert o.shape == (batch,)
        # Tolerance covers the (intentional) bf16 storage of the streamed tables.
        assert jnp.allclose(o, r, atol=1e-4, rtol=1e-4), (o, r)

    # --- scoring path with an initial memory state m (accumulator seeding) ---
    m_u0 = 0.001 * jax.random.normal(keys[6 * n_steps], (n_users, d), jnp.float32)
    m_i0 = 0.001 * jax.random.normal(keys[6 * n_steps + 1], (n_items, d), jnp.float32)
    out_m = temporal_biased_mf_forward(prepared, uu, ii, rr, vv, jj,
                                       m=(m_u0, m_i0), T=T)
    out_m = [jax.block_until_ready(o) for o in out_m]
    ref_m = temporal_biased_mf_forward_ref(params_raw, uu, ii, rr, vv, jj,
                                           m=(m_u0, m_i0), T=T)
    for o, r in zip(out_m, ref_m):
        assert jnp.allclose(o, r, atol=1e-4, rtol=1e-4), (o, r)

    # --- detach branch (keeps the original leading unsqueezed dim) -----------
    det = temporal_biased_mf_forward(prepared, uu, ii, rr, vv, jj, m=None,
                                     detach=True, T=T)
    assert det[0].shape == (1, n_users, d) and det[1].shape == (1, n_items, d)

    print("KERNEL_OK")
</pallas_src>

<mosaic_0001>
module attributes {stable_mosaic.version = 11 : i64} {
  func.func @_tail_decode_kernel(%arg0: i32, %arg1: memref<1x1x128xi32, #tpu.memory_space<vmem>>, %arg2: memref<1x1x128xi32, #tpu.memory_space<vmem>>, %arg3: memref<1x128x64xbf16, #tpu.memory_space<vmem>>, %arg4: memref<1x128x80xbf16, #tpu.memory_space<vmem>>, %arg5: memref<1x8x64xf32, #tpu.memory_space<vmem>>, %arg6: memref<1x8x80xf32, #tpu.memory_space<vmem>>, %arg7: memref<128x64xf32, #tpu.memory_space<vmem>>, %arg8: memref<128x80xf32, #tpu.memory_space<vmem>>, %arg9: memref<3xf32, #tpu.memory_space<smem>>, %arg10: memref<1x1x128xf32, #tpu.memory_space<vmem>>, %arg11: memref<128x64xf32, #tpu.memory_space<vmem>>, %arg12: memref<128x80xf32, #tpu.memory_space<vmem>>) attributes {dimension_semantics = [#tpu.dimension_semantics<arbitrary>], iteration_bounds = array<i64: 3>, scalar_prefetch = 0 : i64, scratch_operands = 2 : i64, tpu.core_type = #tpu.core_type<tc>, window_params = [{transform_indices = @transform_0, window_bounds = array<i64: 1, 1, 128>}, {transform_indices = @transform_1, window_bounds = array<i64: 1, 1, 128>}, {transform_indices = @transform_2, window_bounds = array<i64: 1, 128, 64>}, {transform_indices = @transform_3, window_bounds = array<i64: 1, 128, 80>}, {transform_indices = @transform_4, window_bounds = array<i64: 1, 8, 64>}, {transform_indices = @transform_5, window_bounds = array<i64: 1, 8, 80>}, {pipeline_mode = #tpu.pipeline_mode<synchronous>, transform_indices = @transform_6, window_bounds = array<i64: 128, 64>}, {pipeline_mode = #tpu.pipeline_mode<synchronous>, transform_indices = @transform_7, window_bounds = array<i64: 128, 80>}, {transform_indices = @transform_8, window_bounds = array<i64: 3>}, {transform_indices = @transform_9, window_bounds = array<i64: 1, 1, 128>}]} {
    %c0_i32 = arith.constant 0 : i32
    %0 = arith.cmpi eq, %arg0, %c0_i32 : i32
    %1 = arith.extui %0 : i1 to i32
    %c0_i32_0 = arith.constant 0 : i32
    %2 = arith.cmpi ne, %1, %c0_i32_0 : i32
    scf.if %2 {
      %c0_37 = arith.constant 0 : index
      %c0_38 = arith.constant 0 : index
      %53 = vector.load %arg7[%c0_37, %c0_38] : memref<128x64xf32, #tpu.memory_space<vmem>>, vector<128x64xf32>
      %c0_39 = arith.constant 0 : index
      %c0_40 = arith.constant 0 : index
      %54 = vector.load %arg11[%c0_39, %c0_40] : memref<128x64xf32, #tpu.memory_space<vmem>>, vector<128x64xf32>
      tpu.vector_store %arg11[%c0_39, %c0_40], %53 {strides = array<i32>} : memref<128x64xf32, #tpu.memory_space<vmem>>, vector<128x64xf32>,
      %c0_41 = arith.constant 0 : index
      %c0_42 = arith.constant 0 : index
      %55 = vector.load %arg8[%c0_41, %c0_42] : memref<128x80xf32, #tpu.memory_space<vmem>>, vector<128x80xf32>
      %c0_43 = arith.constant 0 : index
      %c0_44 = arith.constant 0 : index
      %56 = vector.load %arg12[%c0_43, %c0_44] : memref<128x80xf32, #tpu.memory_space<vmem>>, vector<128x80xf32>
      tpu.vector_store %arg12[%c0_43, %c0_44], %55 {strides = array<i32>} : memref<128x80xf32, #tpu.memory_space<vmem>>, vector<128x80xf32>,
    } else {
    }
    %c0 = arith.constant 0 : index
    %c0_1 = arith.constant 0 : index
    %3 = vector.load %arg11[%c0, %c0_1] : memref<128x64xf32, #tpu.memory_space<vmem>>, vector<128x64xf32>
    %c0_2 = arith.constant 0 : index
    %c0_3 = arith.constant 0 : index
    %c0_4 = arith.constant 0 : index
    %4 = vector.load %arg3[%c0_2, %c0_3, %c0_4] : memref<1x128x64xbf16, #tpu.memory_space<vmem>>, vector<1x128x64xbf16>
    %5 = vector.shape_cast %4 : vector<1x128x64xbf16> to vector<128x64xbf16>
    %6 = arith.extf %5 : vector<128x64xbf16> to vector<128x64xf32>
    %7 = arith.addf %3, %6 : vector<128x64xf32>
    %c0_5 = arith.constant 0 : index
    %c0_6 = arith.constant 0 : index
    %8 = vector.load %arg11[%c0_5, %c0_6] : memref<128x64xf32, #tpu.memory_space<vmem>>, vector<128x64xf32>
    tpu.vector_store %arg11[%c0_5, %c0_6], %7 {strides = array<i32>} : memref<128x64xf32, #tpu.memory_space<vmem>>, vector<128x64xf32>,
    %c0_7 = arith.constant 0 : index
    %c0_8 = arith.constant 0 : index
    %9 = vector.load %arg12[%c0_7, %c0_8] : memref<128x80xf32, #tpu.memory_space<vmem>>, vector<128x80xf32>
    %c0_9 = arith.constant 0 : index
    %c0_10 = arith.constant 0 : index
    %c0_11 = arith.constant 0 : index
    %10 = vector.load %arg4[%c0_9, %c0_10, %c0_11] : memref<1x128x80xbf16, #tpu.memory_space<vmem>>, vector<1x128x80xbf16>
    %11 = vector.shape_cast %10 : vector<1x128x80xbf16> to vector<128x80xbf16>
    %12 = arith.extf %11 : vector<128x80xbf16> to vector<128x80xf32>
    %13 = arith.addf %9, %12 : vector<128x80xf32>
    %c0_12 = arith.constant 0 : index
    %c0_13 = arith.constant 0 : index
    %14 = vector.load %arg12[%c0_12, %c0_13] : memref<128x80xf32, #tpu.memory_space<vmem>>, vector<128x80xf32>
    tpu.vector_store %arg12[%c0_12, %c0_13], %13 {strides = array<i32>} : memref<128x80xf32, #tpu.memory_space<vmem>>, vector<128x80xf32>,
    %c0_14 = arith.constant 0 : index
    %c0_15 = arith.constant 0 : index
    %c0_16 = arith.constant 0 : index
    %15 = vector.load %arg1[%c0_14, %c0_15, %c0_16] : memref<1x1x128xi32, #tpu.memory_space<vmem>>, vector<1x1x128xi32>
    %16 = vector.shape_cast %15 : vector<1x1x128xi32> to vector<1x128xi32>
    %17 = tpu.iota {dimensions = array<i32: 0>} : vector<64x128xi32>
    %18 = vector.broadcast %16 : vector<1x128xi32> to vector<64x128xi32>
    %19 = arith.cmpi eq, %17, %18 : vector<64x128xi32>
    %20 = arith.extui %19 : vector<64x128xi1> to vector<64x128xi32>
    %21 = arith.sitofp %20 : vector<64x128xi32> to vector<64x128xf32>
    %c0_17 = arith.constant 0 : index
    %c0_18 = arith.constant 0 : index
    %22 = vector.load %arg11[%c0_17, %c0_18] : memref<128x64xf32, #tpu.memory_space<vmem>>, vector<128x64xf32>
    %cst = arith.constant dense<0.000000e+00> : vector<128x128xf32>
    %23 = tpu.matmul %22, %21, %cst {dimension_numbers = #tpu.dot_dimension_numbers<[1], [0], [0], [1], [0, 0, 1, 1], [], []>, precision = #tpu.contract_precision<fp32>} : vector<128x64xf32>, vector<64x128xf32>, vector<128x128xf32> -> vector<128x128xf32>
    %c0_19 = arith.constant 0 : index
    %c0_20 = arith.constant 0 : index
    %c0_21 = arith.constant 0 : index
    %24 = vector.load %arg5[%c0_19, %c0_20, %c0_21] : memref<1x8x64xf32, #tpu.memory_space<vmem>>, vector<1x8x64xf32>
    %25 = vector.shape_cast %24 : vector<1x8x64xf32> to vector<8x64xf32>
    %cst_22 = arith.constant dense<0.000000e+00> : vector<8x128xf32>
    %26 = tpu.matmul %25, %21, %cst_22 {dimension_numbers = #tpu.dot_dimension_numbers<[1], [0], [0], [1], [0, 0, 1, 1], [], []>, precision = #tpu.contract_precision<fp32>} : vector<8x64xf32>, vector<64x128xf32>, vector<8x128xf32> -> vector<8x128xf32>
    %27 = vector.extract_strided_slice %26 {offsets = [0, 0], sizes = [1, 128], strides = [1, 1]} : vector<8x128xf32> to vector<1x128xf32>
    %c0_23 = arith.constant 0 : index
    %c0_24 = arith.constant 0 : index
    %c0_25 = arith.constant 0 : index
    %28 = vector.load %arg2[%c0_23, %c0_24, %c0_25] : memref<1x1x128xi32, #tpu.memory_space<vmem>>, vector<1x1x128xi32>
    %29 = vector.shape_cast %28 : vector<1x1x128xi32> to vector<1x128xi32>
    %30 = tpu.iota {dimensions = array<i32: 0>} : vector<80x128xi32>
    %31 = vector.broadcast %29 : vector<1x128xi32> to vector<80x128xi32>
    %32 = arith.cmpi eq, %30, %31 : vector<80x128xi32>
    %33 = arith.extui %32 : vector<80x128xi1> to vector<80x128xi32>
    %34 = arith.sitofp %33 : vector<80x128xi32> to vector<80x128xf32>
    %c0_26 = arith.constant 0 : index
    %c0_27 = arith.constant 0 : index
    %35 = vector.load %arg12[%c0_26, %c0_27] : memref<128x80xf32, #tpu.memory_space<vmem>>, vector<128x80xf32>
    %cst_28 = arith.constant dense<0.000000e+00> : vector<128x128xf32>
    %36 = tpu.matmul %35, %34, %cst_28 {dimension_numbers = #tpu.dot_dimension_numbers<[1], [0], [0], [1], [0, 0, 1, 1], [], []>, precision = #tpu.contract_precision<fp32>} : vector<128x80xf32>, vector<80x128xf32>, vector<128x128xf32> -> vector<128x128xf32>
    %c0_29 = arith.constant 0 : index
    %c0_30 = arith.constant 0 : index
    %c0_31 = arith.constant 0 : index
    %37 = vector.load %arg6[%c0_29, %c0_30, %c0_31] : memref<1x8x80xf32, #tpu.memory_space<vmem>>, vector<1x8x80xf32>
    %38 = vector.shape_cast %37 : vector<1x8x80xf32> to vector<8x80xf32>
    %cst_32 = arith.constant dense<0.000000e+00> : vector<8x128xf32>
    %39 = tpu.matmul %38, %34, %cst_32 {dimension_numbers = #tpu.dot_dimension_numbers<[1], [0], [0], [1], [0, 0, 1, 1], [], []>, precision = #tpu.contract_precision<fp32>} : vector<8x80xf32>, vector<80x128xf32>, vector<8x128xf32> -> vector<8x128xf32>
    %40 = vector.extract_strided_slice %39 {offsets = [0, 0], sizes = [1, 128], strides = [1, 1]} : vector<8x128xf32> to vector<1x128xf32>
    %41 = arith.mulf %23, %36 : vector<128x128xf32>
    %cst_33 = arith.constant dense<0.000000e+00> : vector<128xf32>
    %42 = vector.multi_reduction <add>, %41, %cst_33 [0] : vector<128x128xf32> to vector<128xf32>
    %43 = vector.shape_cast %42 : vector<128xf32> to vector<1x128xf32>
    %44 = arith.addf %43, %27 : vector<1x128xf32>
    %45 = arith.addf %44, %40 : vector<1x128xf32>
    %46 = arith.index_cast %arg0 : i32 to index
    %47 = memref.load %arg9[%46] : memref<3xf32, #tpu.memory_space<smem>>
    %48 = vector.broadcast %47 : f32 to vector<1x128xf32>
    %49 = arith.addf %45, %48 : vector<1x128xf32>
    %c0_34 = arith.constant 0 : index
    %c0_35 = arith.constant 0 : index
    %c0_36 = arith.constant 0 : index
    %50 = vector.load %arg10[%c0_34, %c0_35, %c0_36] : memref<1x1x128xf32, #tpu.memory_space<vmem>>, vector<1x1x128xf32>
    %51 = vector.shape_cast %50 : vector<1x1x128xf32> to vector<1x128xf32>
    %52 = vector.shape_cast %49 : vector<1x128xf32> to vector<1x1x128xf32>
    tpu.vector_store %arg10[%c0_34, %c0_35, %c0_36], %52 {strides = array<i32>} : memref<1x1x128xf32, #tpu.memory_space<vmem>>, vector<1x1x128xf32>,
    return
  }
  func.func @transform_0(%arg0: i32) -> (i32, i32, i32) {
    %c0_i32 = arith.constant 0 : i32
    %c0_i32_0 = arith.constant 0 : i32
    %c0_i32_1 = arith.constant 0 : i32
    return %arg0, %c0_i32, %c0_i32_0 : i32, i32, i32
  }
  func.func @transform_1(%arg0: i32) -> (i32, i32, i32) {
    %c0_i32 = arith.constant 0 : i32
    %c0_i32_0 = arith.constant 0 : i32
    %c0_i32_1 = arith.constant 0 : i32
    return %arg0, %c0_i32, %c0_i32_0 : i32, i32, i32
  }
  func.func @transform_2(%arg0: i32) -> (i32, i32, i32) {
    %c1_i32 = arith.constant 1 : i32
    %0 = arith.addi %arg0, %c1_i32 : i32
    %c0_i32 = arith.constant 0 : i32
    %c0_i32_0 = arith.constant 0 : i32
    %c0_i32_1 = arith.constant 0 : i32
    return %0, %c0_i32, %c0_i32_0 : i32, i32, i32
  }
  func.func @transform_3(%arg0: i32) -> (i32, i32, i32) {
    %c1_i32 = arith.constant 1 : i32
    %0 = arith.addi %arg0, %c1_i32 : i32
    %c0_i32 = arith.constant 0 : i32
    %c0_i32_0 = arith.constant 0 : i32
    %c0_i32_1 = arith.constant 0 : i32
    return %0, %c0_i32, %c0_i32_0 : i32, i32, i32
  }
  func.func @transform_4(%arg0: i32) -> (i32, i32, i32) {
    %c1_i32 = arith.constant 1 : i32
    %0 = arith.addi %arg0, %c1_i32 : i32
    %c0_i32 = arith.constant 0 : i32
    %c0_i32_0 = arith.constant 0 : i32
    %c0_i32_1 = arith.constant 0 : i32
    return %0, %c0_i32, %c0_i32_0 : i32, i32, i32
  }
  func.func @transform_5(%arg0: i32) -> (i32, i32, i32) {
    %c1_i32 = arith.constant 1 : i32
    %0 = arith.addi %arg0, %c1_i32 : i32
    %c0_i32 = arith.constant 0 : i32
    %c0_i32_0 = arith.constant 0 : i32
    %c0_i32_1 = arith.constant 0 : i32
    return %0, %c0_i32, %c0_i32_0 : i32, i32, i32
  }
  func.func @transform_6(%arg0: i32) -> (i32, i32) {
    %c0_i32 = arith.constant 0 : i32
    %c0_i32_0 = arith.constant 0 : i32
    %c0_i32_1 = arith.constant 0 : i32
    return %c0_i32, %c0_i32_0 : i32, i32
  }
  func.func @transform_7(%arg0: i32) -> (i32, i32) {
    %c0_i32 = arith.constant 0 : i32
    %c0_i32_0 = arith.constant 0 : i32
    %c0_i32_1 = arith.constant 0 : i32
    return %c0_i32, %c0_i32_0 : i32, i32
  }
  func.func @transform_8(%arg0: i32) -> i32 {
    %c0_i32 = arith.constant 0 : i32
    %c0_i32_0 = arith.constant 0 : i32
    return %c0_i32 : i32
  }
  func.func @transform_9(%arg0: i32) -> (i32, i32, i32) {
    %c0_i32 = arith.constant 0 : i32
    %c0_i32_0 = arith.constant 0 : i32
    %c0_i32_1 = arith.constant 0 : i32
    return %arg0, %c0_i32, %c0_i32_0 : i32, i32, i32
  }
}

</mosaic_0001>

<bundles_post_ra>
// kernel: tpu_custom_call.1
= control target key start
LH: loop header
LB: loop body
LE: loop exit
PB: predicated region body
PF: predicated region fallthrough
CT: control target
= control target key end

     0   :  { %s5174_s0 = inlined_call_operand.vmem [shape: s32[3,1,128], index: 0, kind: input, shape index: {}]   ;;  %s5175_s1 = inlined_call_operand.vmem [shape: s32[3,1,128], index: 1, kind: input, shape index: {}]   ;;  %s5176_s2 = inlined_call_operand.vmem [shape: bf16[4,128,64], index: 2, kind: input, shape index: {}]   ;;  %s5177_s3 = inlined_call_operand.vmem [shape: bf16[4,128,80], index: 3, kind: input, shape index: {}]   ;;  %s5178_s4 = inlined_call_operand.vmem [shape: f32[4,8,64], index: 4, kind: input, shape index: {}]   ;;  %s5179_s5 = inlined_call_operand.vmem [shape: f32[4,8,80], index: 5, kind: input, shape index: {}]   ;;  %s5180_s6 = inlined_call_operand.vmem [shape: f32[128,64], index: 6, kind: input, shape index: {}]   ;;  %s5181_s7 = inlined_call_operand.vmem [shape: f32[128,80], index: 7, kind: input, shape index: {}]   ;;  %s5182_s8 = inlined_call_operand.vmem [shape: f32[3], index: 8, kind: input, shape index: {}]   ;;  %s5183_s9 = inlined_call_operand.hbm [shape: f32[3,1,128], index: 9, kind: output, shape index: {}]  }
   0x1   :  { %5232 = sst [smem:[#allocation95_spill]] %s5182_s8 }
   0x2   :  { %14 = vsyncpa [#allocation6], 0 }
   0x3   :  { %15 = vsyncpa [#allocation5], 0 }
   0x4   :  { %17 = vsyncpa [#allocation5 + $0x1], 0  ;;  %s3409_s30 = smov 0   ;;  %s3411_s10 = smov 0  }
   0x5   :  { %s3413_s11 = smov 0   ;;  %s3415_s12 = smov 0  }
   0x6 LB: > { %5233 = sst [smem:[#allocation10_spill]] %s3350_s11  ;;  %s3430_s13 = sadd.s32 4294967295, %s3354_s12   ;;  %s3354_s12 = sphi %s3415_s12, %s5498_s12   ;;  %s3350_s11 = sphi %s3413_s11, %s5500_s11   ;;  %s3346_s10 = sphi %s3411_s10, %s5502_s10   ;;  %s3342_s30 = sphi %s3409_s30, %s5501_s30  }
   0x7   : > { %s2998_s14 = sadd.s32 4294967294, %s3354_s12   ;;  %s3434_s15 = sadd.s32 1, %s3354_s12  }
   0x8   : > { %5234 = sst [smem:[#allocation11_spill]] %s3434_s15  ;;  %s257_s16 = sadd.s32 1, %s3350_s11 }
   0x9   : > { %s254_s17 = ssub.s32 %s3354_s12, %s3434_s15  ;;  %p267_p0 = scmp.ne.s32.totalorder %s3350_s11, %s3346_s10 }
   0xa   : > { %p255_p1 = scmp.eq.s32.totalorder %s254_s17, 0  ;;  %p268_p2 = scmp.eq.s32.totalorder %s3430_s13, 2 }
   0xb   : > { %p273_p3 = scmp.ne.s32.totalorder %s3346_s10, %s3342_s30  ;;  %p274_p4 = scmp.eq.s32.totalorder %s2998_s14, 2 }
   0xc   : > { %s3445_s18 = scalar_select %p255_p1, %s3350_s11, %s257_s16  }
   0xd   : > { %p3447_p5 = por %p268_p2, %p267_p0  ;;  %p3451_p6 = por %p274_p4, %p273_p3 }
   0xe   : > { %5235 = sst [smem:[#allocation12_spill]] %s3445_s18  ;;  %p2999_p7 = scmp.ge.s32.totalorder %s3354_s12, 1 }
   0xf   : > { %s5237_s20 = scalar_select %p3451_p6, 1, 0 }
  0x10   : > { %p281_p8 = scmp.lt.s32.totalorder %s3354_s12, 4  ;;  %p3000_p9 = scmp.ne.s32.totalorder %s3430_s13, 0 }
  0x11   : > { %5238 = sst [smem:[#allocation13_spill]] %s5237_s20  ;;  %p3233_p10 = scmp.eq.s32.totalorder %s3430_s13, 0 }
  0x12   : > { %p282_p11 = pnand %p2999_p7, %p281_p8  ;;  %s5239_s8 = sld [smem:[#allocation95_spill]] }
  0x13   : > { %s3356_s24 = smov [#allocation4]  }
  0x14   : > { %p3225_p12 = pneg %p282_p11 }
  0x15   : > { %362 = sbr.rel (%p282_p11) target bundleno = 675 (0x2a3), region = 56 }
  0x16   : > { %p3226_p13 = pnand %p3233_p10, %p3225_p12 }
  0x18   : > { %s299_s23 = sshll.u32 %s5239_s8, 4  ;;  %s300_s23 = int_to_ptr.vmem [resolvable:$true] %s299_s23 }
  0x19   : > { %3228 = dma.vmem_to_smem (!%p3226_p13), %s300_s23, 16, %s3356_s24, [#allocation6]  }
  0x1a   : > { %3333 = dma.done.wait (%p3233_p10), [#allocation6], 16  }
  0x1b   : > { %3335 = vsyncadd (%p3233_p10), [#allocation6], 4294967280 }
  0x1c   : > { %369 = sfence }
  0x1d   : > { %p422_p0 = scmp.lt.s32.totalorder %s3430_s13, 2  ;;  %s428_s26 = sadd.s32 1, %s3430_s13 }
  0x1e   : > { %p429_p1 = scmp.lt.s32.totalorder %s428_s26, 3 }
  0x1f   : > { %s3466_s27 = scalar_select %p422_p0, %s3430_s13, 2 }
  0x20   : > { %s5504_s26 = smov (!%p429_p1, %s428_s26), 3 }
  0x21   : > { %s3139_s22 = sshll.u32 %s5504_s26, 6  ;;  %s3008_s23 = sshll.u32 %s5504_s26, 3 }
  0x22   : > { %s3479_s8 = scalar_lea.vmem %s5176_s2, %s3139_s22  ;;  %s3484_s15 = scalar_lea.vmem %s5177_s3, %s3139_s22 }
  0x23   : > { %s3489_s29 = scalar_lea.vmem %s5178_s4, %s3008_s23  ;;  %s3494_s21 = scalar_lea.vmem %s5179_s5, %s3008_s23 }
  0x24   : > { %s5240_s26 = sand.u32 1, %s3346_s10   ;;  %457 = sbr.rel (%p3000_p9) target bundleno = 74 (0x4a), region = 64 }
  0x25   : > { %s3498_s14 = scalar_lea.vmem [#allocation7], %s5240_s26 }
  0x29   : > { %v458_v0 = vld [vmem:[%s5180_s6] sm:$0xff]  ;;  %vm474_vm0 = vcmask 523264   ;;  %v459_v1 = vld [vmem:[%s5180_s6 + $0x8] sm:$0xff]  ;;  %v460_v2 = vld [vmem:[%s5180_s6 + $0x10] sm:$0xff]  ;;  %vm507_vm1 = vcmask 654336  }
  0x2a   : > { %475 = vst.msk [vmem:[#allocation2] sm:$0xff] %vm474_vm0, %v458_v0  ;;  %v461_v3 = vld [vmem:[%s5180_s6 + $0x18] sm:$0xff]  ;;  %v462_v4 = vld [vmem:[%s5180_s6 + $0x20] sm:$0xff]  ;;  %v463_v5 = vld [vmem:[%s5180_s6 + $0x28] sm:$0xff] }
  0x2b   : > { %476 = vst.msk [vmem:[#allocation2 + $0x8] sm:$0xff] %vm474_vm0, %v459_v1  ;;  %v464_v6 = vld [vmem:[%s5180_s6 + $0x30] sm:$0xff]  ;;  %v465_v7 = vld [vmem:[%s5180_s6 + $0x38] sm:$0xff]  ;;  %v466_v8 = vld [vmem:[%s5180_s6 + $0x40] sm:$0xff] }
  0x2c   : > { %477 = vst.msk [vmem:[#allocation2 + $0x10] sm:$0xff] %vm474_vm0, %v460_v2  ;;  %v467_v9 = vld [vmem:[%s5180_s6 + $0x48] sm:$0xff]  ;;  %v468_v10 = vld [vmem:[%s5180_s6 + $0x50] sm:$0xff]  ;;  %v469_v11 = vld [vmem:[%s5180_s6 + $0x58] sm:$0xff] }
  0x2d   : > { %478 = vst.msk [vmem:[#allocation2 + $0x18] sm:$0xff] %vm474_vm0, %v461_v3  ;;  %v470_v12 = vld [vmem:[%s5180_s6 + $0x60] sm:$0xff]  ;;  %v471_v13 = vld [vmem:[%s5180_s6 + $0x68] sm:$0xff]  ;;  %v472_v14 = vld [vmem:[%s5180_s6 + $0x70] sm:$0xff] }
  0x2e   : > { %479 = vst.msk [vmem:[#allocation2 + $0x20] sm:$0xff] %vm474_vm0, %v462_v4  ;;  %v473_v15 = vld [vmem:[%s5180_s6 + $0x78] sm:$0xff]  ;;  %v491_v16 = vld [vmem:[%s5181_s7] sm:$0xff]  ;;  %v492_v17 = vld [vmem:[%s5181_s7 + $0x8] sm:$0xff] }
  0x2f   : > { %480 = vst.msk [vmem:[#allocation2 + $0x28] sm:$0xff] %vm474_vm0, %v463_v5  ;;  %v493_v18 = vld [vmem:[%s5181_s7 + $0x10] sm:$0xff]  ;;  %v494_v19 = vld [vmem:[%s5181_s7 + $0x18] sm:$0xff]  ;;  %v495_v20 = vld [vmem:[%s5181_s7 + $0x20] sm:$0xff] }
  0x30   : > { %481 = vst.msk [vmem:[#allocation2 + $0x30] sm:$0xff] %vm474_vm0, %v464_v6  ;;  %v496_v21 = vld [vmem:[%s5181_s7 + $0x28] sm:$0xff]  ;;  %v497_v22 = vld [vmem:[%s5181_s7 + $0x30] sm:$0xff]  ;;  %v498_v23 = vld [vmem:[%s5181_s7 + $0x38] sm:$0xff] }
  0x31   : > { %482 = vst.msk [vmem:[#allocation2 + $0x38] sm:$0xff] %vm474_vm0, %v465_v7  ;;  %v499_v24 = vld [vmem:[%s5181_s7 + $0x40] sm:$0xff]  ;;  %v500_v25 = vld [vmem:[%s5181_s7 + $0x48] sm:$0xff]  ;;  %v501_v26 = vld [vmem:[%s5181_s7 + $0x50] sm:$0xff] }
  0x32   : > { %483 = vst.msk [vmem:[#allocation2 + $0x40] sm:$0xff] %vm474_vm0, %v466_v8  ;;  %v502_v27 = vld [vmem:[%s5181_s7 + $0x58] sm:$0xff]  ;;  %v503_v28 = vld [vmem:[%s5181_s7 + $0x60] sm:$0xff]  ;;  %v504_v29 = vld [vmem:[%s5181_s7 + $0x68] sm:$0xff] }
  0x33   : > { %484 = vst.msk [vmem:[#allocation2 + $0x48] sm:$0xff] %vm474_vm0, %v467_v9  ;;  %v505_v30 = vld [vmem:[%s5181_s7 + $0x70] sm:$0xff]  ;;  %v506_v31 = vld [vmem:[%s5181_s7 + $0x78] sm:$0xff] }
  0x34   : > { %485 = vst.msk [vmem:[#allocation2 + $0x50] sm:$0xff] %vm474_vm0, %v468_v10 }
  0x35   : > { %486 = vst.msk [vmem:[#allocation2 + $0x58] sm:$0xff] %vm474_vm0, %v469_v11 }
  0x36   : > { %487 = vst.msk [vmem:[#allocation2 + $0x60] sm:$0xff] %vm474_vm0, %v470_v12 }
  0x37   : > { %488 = vst.msk [vmem:[#allocation2 + $0x68] sm:$0xff] %vm474_vm0, %v471_v13 }
  0x38   : > { %489 = vst.msk [vmem:[#allocation2 + $0x70] sm:$0xff] %vm474_vm0, %v472_v14 }
  0x39   : > { %490 = vst.msk [vmem:[#allocation2 + $0x78] sm:$0xff] %vm474_vm0, %v473_v15 }
  0x3a   : > { %508 = vst.msk [vmem:[#allocation3] sm:$0xff] %vm507_vm1, %v491_v16 }
  0x3b   : > { %509 = vst.msk [vmem:[#allocation3 + $0x8] sm:$0xff] %vm507_vm1, %v492_v17 }
  0x3c   : > { %510 = vst.msk [vmem:[#allocation3 + $0x10] sm:$0xff] %vm507_vm1, %v493_v18 }
  0x3d   : > { %511 = vst.msk [vmem:[#allocation3 + $0x18] sm:$0xff] %vm507_vm1, %v494_v19 }
  0x3e   : > { %512 = vst.msk [vmem:[#allocation3 + $0x20] sm:$0xff] %vm507_vm1, %v495_v20 }
  0x3f   : > { %513 = vst.msk [vmem:[#allocation3 + $0x28] sm:$0xff] %vm507_vm1, %v496_v21 }
  0x40   : > { %514 = vst.msk [vmem:[#allocation3 + $0x30] sm:$0xff] %vm507_vm1, %v497_v22 }
  0x41   : > { %515 = vst.msk [vmem:[#allocation3 + $0x38] sm:$0xff] %vm507_vm1, %v498_v23 }
  0x42   : > { %516 = vst.msk [vmem:[#allocation3 + $0x40] sm:$0xff] %vm507_vm1, %v499_v24 }
  0x43   : > { %517 = vst.msk [vmem:[#allocation3 + $0x48] sm:$0xff] %vm507_vm1, %v500_v25 }
  0x44   : > { %518 = vst.msk [vmem:[#allocation3 + $0x50] sm:$0xff] %vm507_vm1, %v501_v26 }
  0x45   : > { %519 = vst.msk [vmem:[#allocation3 + $0x58] sm:$0xff] %vm507_vm1, %v502_v27 }
  0x46   : > { %520 = vst.msk [vmem:[#allocation3 + $0x60] sm:$0xff] %vm507_vm1, %v503_v28 }
  0x47   : > { %521 = vst.msk [vmem:[#allocation3 + $0x68] sm:$0xff] %vm507_vm1, %v504_v29 }
  0x48   : > { %522 = vst.msk [vmem:[#allocation3 + $0x70] sm:$0xff] %vm507_vm1, %v505_v30 }
  0x49   : > { %523 = vst.msk [vmem:[#allocation3 + $0x78] sm:$0xff] %vm507_vm1, %v506_v31 }
  0x4a PF: > { %v687_v32 = vlaneseq  ;;  %s5241_s25 = scalar_lea.vmem %s5174_s0, %s3466_s27  ;;  %v3636_v34 = vld [vmem:[%s3479_s8] sm:$0xff]   ;;  %v3641_v36 = vld [vmem:[%s3479_s8 + $0x8] sm:$0xff]   ;;  %vm588_vm2 = vcmask 523264   ;;  %v5196_v53 = vmov 1.0   ;;  %v3358_v54 = vmov 0.0   ;;  %v526_v20 = vld [vmem:[#allocation2 + $0x10] sm:$0xff]  ;;  %s5258_s18 = scalar_lea.vmem %s5175_s1, %s3466_s27 }
  0x4b   : > { %v3271_v33 = vld [vmem:[%s5241_s25] ss:$0 sm:$0xff]  ;;  %v3143_v37 = vunpack.c.l.bf16 %v3636_v34  ;;  %v3144_v38 = vunpack.c.h.bf16 %v3636_v34  ;;  %v3147_v39 = vunpack.c.l.bf16 %v3641_v36  ;;  %v3148_v40 = vunpack.c.h.bf16 %v3641_v36  ;;  %v525_v19 = vld [vmem:[#allocation2 + $0x8] sm:$0xff]  ;;  %v527_v21 = vld [vmem:[#allocation2 + $0x18] sm:$0xff]  ;;  %s2875_s20 = sshll.u32 %s3498_s14, 4  ;;  %s5496_s24 = sand.u32 1, %s3346_s10   ;;  %s2876_s20 = int_to_ptr.vmem [resolvable:$true] %s2875_s20 }
  0x4c   : > { %v3638_v35 = vshrl.u32 %v687_v32, 7  ;;  %v524_v7 = vld [vmem:[#allocation2] sm:$0xff]  ;;  %v3206_v26 = vld [vmem:[%s3479_s8 + $0x10] sm:$0xff]   ;;  %vm5188_vm0 = vcmask 654336   ;;  %s2865_s23 = scalar_lea.sflag [#allocation5], %s5496_s24  ;;  %s3308_s26 = scalar_lea.hbm %s5183_s9, 3 }
  0x4d   : > { %v572_v17 = vadd.f32 %v3143_v37, %v524_v7  ;;  %v573_v31 = vadd.f32 %v3144_v38, %v525_v19  ;;  %v574_v32 = vadd.f32 %v3147_v39, %v526_v20  ;;  %v528_v37 = vld [vmem:[#allocation2 + $0x20] sm:$0xff]  ;;  %v3213_v1 = vld [vmem:[%s3484_s15 + $0x10] sm:$0xff]  }
  0x4e   : > { %v3648_v41 = vadd.s32 56, %v3638_v35  ;;  %v3651_v42 = vadd.s32 48, %v3638_v35  ;;  %v3654_v43 = vadd.s32 40, %v3638_v35  ;;  %v3657_v44 = vadd.s32 32, %v3638_v35 }
  0x4f   : > { %v3660_v45 = vadd.s32 24, %v3638_v35  ;;  %v3663_v46 = vadd.s32 16, %v3638_v35  ;;  %v3666_v47 = vadd.s32 8, %v3638_v35  ;;  %vm3669_vm3 = vcmp.eq.s32.totalorder %v3638_v35, %v3271_v33  ;;  %589 = vst.msk [vmem:[#allocation2] sm:$0xff] %vm588_vm2, %v572_v17 }
  0x50   : > { %vm3674_vm4 = vcmp.eq.s32.totalorder %v3648_v41, %v3271_v33  ;;  %vm3679_vm5 = vcmp.eq.s32.totalorder %v3651_v42, %v3271_v33  ;;  %vm3684_vm6 = vcmp.eq.s32.totalorder %v3654_v43, %v3271_v33  ;;  %vm3689_vm7 = vcmp.eq.s32.totalorder %v3657_v44, %v3271_v33  ;;  %590 = vst.msk [vmem:[#allocation2 + $0x8] sm:$0xff] %vm588_vm2, %v573_v31  ;;  %v530_v31 = vld [vmem:[#allocation2 + $0x30] sm:$0xff] }
  0x51   : > { %3019 = vmatpush.msk.msra.mxu0 %vm3674_vm4, %v5196_v53  ;;  %v3018_v55 = vsel %vm3674_vm4, 1.0, %v3358_v54  ;;  %3027 = vmatpush.msk.msra.mxu3 %vm3674_vm4, %v5196_v53  ;;  %v3017_v56 = vsel %vm3679_vm5, 1.0, %v3358_v54  ;;  %v3016_v57 = vsel %vm3684_vm6, 1.0, %v3358_v54  ;;  %v3015_v58 = vsel %vm3689_vm7, 1.0, %v3358_v54  ;;  %591 = vst.msk [vmem:[#allocation2 + $0x10] sm:$0xff] %vm588_vm2, %v574_v32 }
  0x52   : > { %v3711_v59 = vsub.f32 %v3018_v55, %v3018_v55  ;;  %v3713_v60 = vsub.f32 %v3017_v56, %v3017_v56  ;;  %v3715_v61 = vsub.f32 %v3016_v57, %v3016_v57  ;;  %v3717_v62 = vsub.f32 %v3015_v58, %v3015_v58  ;;  %v529_v58 = vld [vmem:[#allocation2 + $0x28] sm:$0xff] }
  0x53   : > { %3020 = vmatpush.msk.msra.mxu0 %vm3679_vm5, %v5196_v53  ;;  %3028 = vmatpush.msk.msra.mxu3 %vm3679_vm5, %v5196_v53  ;;  %vm3726_vm8 = vcmp.eq.s32.totalorder %v3660_v45, %v3271_v33  ;;  %vm3731_vm9 = vcmp.eq.s32.totalorder %v3663_v46, %v3271_v33  ;;  %vm3736_vm10 = vcmp.eq.s32.totalorder %v3666_v47, %v3271_v33  ;;  %v3011_v2 = vsel %vm3669_vm3, 1.0, %v3358_v54 }
  0x54   : > { %1069 = vmatpush.msra.mxu2 %v3711_v59  ;;  %v3745_v3 = vand.u32 4294901760, %v3711_v59  ;;  %v3748_v4 = vand.u32 4294901760, %v3713_v60  ;;  %v3014_v5 = vsel %vm3726_vm8, 1.0, %v3358_v54  ;;  %v3754_v6 = vand.u32 4294901760, %v3715_v61 }
  0x55   : > { %3021 = vmatpush.msk.msra.mxu0 %vm3684_vm6, %v5196_v53  ;;  %3029 = vmatpush.msk.msra.mxu3 %vm3684_vm6, %v5196_v53  ;;  %v3762_v8 = vsub.f32 %v3014_v5, %v3014_v5  ;;  %v3013_v9 = vsel %vm3731_vm9, 1.0, %v3358_v54  ;;  %v3768_v10 = vand.u32 4294901760, %v3717_v62  ;;  %v3012_v11 = vsel %vm3736_vm10, 1.0, %v3358_v54 }
  0x56   : > { %1072 = vmatpush.msra.mxu2 %v3713_v60  ;;  %v949_v12 = vsub.f32 %v3711_v59, %v3745_v3  ;;  %v955_v13 = vsub.f32 %v3713_v60, %v3748_v4  ;;  %v961_v14 = vsub.f32 %v3715_v61, %v3754_v6  ;;  %v3780_v15 = vsub.f32 %v3013_v9, %v3013_v9  ;;  %v721_v5 = vld [vmem:[#allocation2] sm:$0xff] }
  0x57   : > { %3022 = vmatpush.msk.msra.mxu0 %vm3689_vm7, %v5196_v53  ;;  %3030 = vmatpush.msk.msra.mxu3 %vm3689_vm7, %v5196_v53  ;;  %v3788_v16 = vsub.f32 %v3012_v11, %v3012_v11  ;;  %v3791_v18 = vand.u32 4294901760, %v3762_v8  ;;  %v967_v24 = vsub.f32 %v3717_v62, %v3768_v10  ;;  %v3796_v25 = vsub.f32 %v3011_v2, %v3011_v2 }
  0x58   : > { %1075 = vmatpush.msra.mxu2 %v3715_v61  ;;  %v950_v22 = vand.u32 4294901760, %v949_v12  ;;  %v956_v23 = vand.u32 4294901760, %v955_v13  ;;  %v962_v27 = vand.u32 4294901760, %v961_v14  ;;  %v3809_v29 = vand.u32 4294901760, %v3780_v15  ;;  %v722_v14 = vld [vmem:[#allocation2 + $0x8] sm:$0xff] }
  0x59   : > { %3023 = vmatpush.msk.msra.mxu0 %vm3726_vm8, %v5196_v53  ;;  %3031 = vmatpush.msk.msra.mxu3 %vm3726_vm8, %v5196_v53  ;;  %v973_v28 = vsub.f32 %v3762_v8, %v3791_v18  ;;  %v3813_v30 = vand.u32 4294901760, %v3788_v16  ;;  %v575_v33 = vadd.f32 %v3148_v40, %v527_v21  ;;  %v3151_v55 = vunpack.c.l.bf16 %v3206_v26  ;;  %v723_v21 = vld [vmem:[#allocation2 + $0x10] sm:$0xff] }
  0x5a   : > { %951 = vmatpush.msra.mxu1 %v950_v22  ;;  %1078 = vmatpush.msra.mxu2 %v3717_v62  ;;  %v968_v34 = vand.u32 4294901760, %v967_v24  ;;  %v979_v38 = vsub.f32 %v3780_v15, %v3809_v29  ;;  %v3831_v36 = vand.u32 4294901760, %v3796_v25  ;;  %v3152_v40 = vunpack.c.h.bf16 %v3206_v26 }
  0x5b   : > { %3024 = vmatpush.msk.msra.mxu0 %vm3731_vm9, %v5196_v53  ;;  %3032 = vmatpush.msk.msra.mxu3 %vm3731_vm9, %v5196_v53  ;;  %v576_v39 = vadd.f32 %v3151_v55, %v528_v37  ;;  %v974_v56 = vand.u32 4294901760, %v973_v28  ;;  %v985_v57 = vsub.f32 %v3788_v16, %v3813_v30  ;;  %592 = vst.msk [vmem:[#allocation2 + $0x18] sm:$0xff] %vm588_vm2, %v575_v33  ;;  %v738_v11 = vsel %vm588_vm2, %v721_v5, 0 }
  0x5c   : > { %957 = vmatpush.msra.mxu1 %v956_v23  ;;  %1081 = vmatpush.msra.mxu2 %v3762_v8  ;;  %v577_v2 = vadd.f32 %v3152_v40, %v529_v58  ;;  %v980_v7 = vand.u32 4294901760, %v979_v38  ;;  %v991_v9 = vsub.f32 %v3796_v25, %v3831_v36  ;;  %v3858_v12 = vand.u32 4294901760, %v738_v11 }
  0x5d   : > { %3025 = vmatpush.msk.msra.mxu0 %vm3736_vm10, %v5196_v53  ;;  %3033 = vmatpush.msk.msra.mxu3 %vm3736_vm10, %v5196_v53  ;;  %593 = vst.msk [vmem:[#allocation2 + $0x20] sm:$0xff] %vm588_vm2, %v576_v39  ;;  %v986_v13 = vand.u32 4294901760, %v985_v57  ;;  %v741_v20 = vsel %vm588_vm2, %v722_v14, 0  ;;  %v744_v26 = vsel %vm588_vm2, %v723_v21, 0 }
  0x5e   : > { %963 = vmatpush.msra.mxu1 %v962_v27  ;;  %1084 = vmatpush.msra.mxu2 %v3780_v15  ;;  %594 = vst.msk [vmem:[#allocation2 + $0x28] sm:$0xff] %vm588_vm2, %v577_v2  ;;  %v810_v17 = vsub.f32 %v738_v11, %v3858_v12  ;;  %v992_v19 = vand.u32 4294901760, %v991_v9  ;;  %v3868_v24 = vand.u32 4294901760, %v741_v20  ;;  %v3878_v55 = vand.u32 4294901760, %v744_v26  ;;  %v531_v2 = vld [vmem:[#allocation2 + $0x38] sm:$0xff] }
  0x5f   : > { %3026 = vmatpush.msk.msra.mxu0 %vm3669_vm3, %v5196_v53  ;;  %3034 = vmatpush.msk.msra.mxu3 %vm3669_vm3, %v5196_v53 }
  0x60   : > { %969 = vmatpush.msra.mxu1 %v968_v34  ;;  %1087 = vmatpush.msra.mxu2 %v3788_v16  ;;  %v811_v28 = vand.u32 4294901760, %v810_v17  ;;  %v818_v32 = vsub.f32 %v741_v20, %v3868_v24  ;;  %v826_v40 = vsub.f32 %v744_v26, %v3878_v55  ;;  %v3208_v20 = vld [vmem:[%s3479_s8 + $0x20] sm:$0xff]  }
  0x61   : > { %1537 = vmatpush.msrb.mxu3 %v950_v22  ;;  %1304 = vmatpush.msrb.mxu0 %v3745_v3  ;;  %v3207_v22 = vld [vmem:[%s3479_s8 + $0x18] sm:$0xff]  }
  0x62   : > { %975 = vmatpush.msra.mxu1 %v974_v56  ;;  %1090 = vmatpush.msra.mxu2 %v3796_v25  ;;  %v812_v37 = vsub.f32 %v810_v17, %v811_v28  ;;  %v724_v39 = vld [vmem:[#allocation2 + $0x18] sm:$0xff]  ;;  %v3156_v58 = vunpack.c.h.bf16 %v3207_v22  ;;  %v827_v9 = vand.u32 4294901760, %v826_v40 }
  0x63   : > { %1543 = vmatpush.msrb.mxu3 %v956_v23  ;;  %1308 = vmatpush.msrb.mxu0 %v3748_v4  ;;  %v3155_v23 = vunpack.c.l.bf16 %v3207_v22  ;;  %v747_v57 = vsel %vm588_vm2, %v724_v39, 0  ;;  %v3159_v22 = vunpack.c.l.bf16 %v3208_v20 }
  0x64   : > { %3043 = vmatpush.msk.msrb.mxu2 %vm3674_vm4, %v5196_v53  ;;  %981 = vmatpush.msra.mxu1 %v980_v7  ;;  %v813_v38 = vand.u32 4294901760, %v812_v37  ;;  %v3905_v11 = vand.u32 4294901760, %v747_v57  ;;  %v828_v14 = vsub.f32 %v826_v40, %v827_v9 }
  0x65   : > { %1549 = vmatpush.msrb.mxu3 %v962_v27  ;;  %1093 = vmatmul.f32.vlgmr.msra.gmra.mxu2 %v810_v17  ;;  %v578_v33 = vadd.f32 %v3155_v23, %v530_v31  ;;  %v819_v27 = vand.u32 4294901760, %v818_v32 }
  0x66   : > { %3044 = vmatpush.msk.msrb.mxu2 %vm3679_vm5, %v5196_v53  ;;  %987 = vmatpush.msra.mxu1 %v986_v13  ;;  %v834_v17 = vsub.f32 %v747_v57, %v3905_v11 }
  0x67   : > { %1555 = vmatpush.msrb.mxu3 %v968_v34  ;;  %595 = vst.msk [vmem:[#allocation2 + $0x30] sm:$0xff] %vm588_vm2, %v578_v33  ;;  %1312 = vmatpush.msrb.mxu0 %v3754_v6  ;;  %v820_v34 = vsub.f32 %v818_v32, %v819_v27  ;;  %v3160_v33 = vunpack.c.h.bf16 %v3208_v20  ;;  %v535_v20 = vld [vmem:[#allocation2 + $0x58] sm:$0xff] }
  0x68   : > { %3045 = vmatpush.msk.msrb.mxu2 %vm3684_vm6, %v5196_v53  ;;  %1199 = vmatmul.f32.vlgmr.msra.gmra.mxu3 %v811_v28  ;;  %v835_v23 = vand.u32 4294901760, %v834_v17 }
  0x69   : > { %993 = vmatpush.msra.mxu1 %v992_v19  ;;  %1561 = vmatpush.msrb.mxu3 %v974_v56  ;;  %v579_v56 = vadd.f32 %v3156_v58, %v531_v2  ;;  %v821_v5 = vand.u32 4294901760, %v820_v34 }
  0x6a   : > { %995 = vmatmul.f32.vlgmr.msra.gmra.mxu1 %v3858_v12  ;;  %3046 = vmatpush.msk.msrb.mxu2 %vm3689_vm7, %v5196_v53 }
  0x6b   : > { %3035 = vmatpush.msk.msrb.mxu1 %vm3674_vm4, %v5196_v53  ;;  %814 = vmatmul.f32.vlgmr.msra.gmra.mxu0 %v813_v38  ;;  %596 = vst.msk [vmem:[#allocation2 + $0x38] sm:$0xff] %vm588_vm2, %v579_v56 }
  0x6c   : > { %3047 = vmatpush.msk.msrb.mxu2 %vm3726_vm8, %v5196_v53  ;;  %1316 = vmatpush.msrb.mxu0 %v3768_v10 }
  0x6d   : > { %3036 = vmatpush.msk.msrb.mxu1 %vm3679_vm5, %v5196_v53  ;;  %1098 = vmatmul.f32.gmra.mxu2 %v818_v32 }
  0x6e   : > { %3048 = vmatpush.msk.msrb.mxu2 %vm3731_vm9, %v5196_v53  ;;  %1567 = vmatpush.msrb.mxu3 %v980_v7  ;;  %v725_v7 = vld [vmem:[#allocation2 + $0x20] sm:$0xff]  ;;  %v727_v39 = vld [vmem:[#allocation2 + $0x30] sm:$0xff] }
  0x6f   : > { %3037 = vmatpush.msk.msrb.mxu1 %vm3684_vm6, %v5196_v53  ;;  %1320 = vmatpush.msrb.mxu0 %v3791_v18  ;;  %v750_v21 = vsel %vm588_vm2, %v725_v7, 0  ;;  %v756_v57 = vsel %vm588_vm2, %v727_v39, 0 }
  0x70   : > { %1205 = vmatmul.f32.gmra.mxu3 %v819_v27  ;;  %3049 = vmatpush.msk.msrb.mxu2 %vm3736_vm10, %v5196_v53  ;;  %v3934_v28 = vand.u32 4294901760, %v750_v21 }
  0x71   : > { %3038 = vmatpush.msk.msrb.mxu1 %vm3689_vm7, %v5196_v53  ;;  %1573 = vmatpush.msrb.mxu3 %v986_v13  ;;  %v532_v13 = vld [vmem:[#allocation2 + $0x40] sm:$0xff] }
  0x72   : > { %999 = vmatmul.f32.gmra.mxu1 %v3868_v24  ;;  %1324 = vmatpush.msrb.mxu0 %v3809_v29  ;;  %v580_v26 = vadd.f32 %v3159_v22, %v532_v13  ;;  %v842_v31 = vsub.f32 %v750_v21, %v3934_v28 }
  0x73   : > { %3039 = vmatpush.msk.msrb.mxu1 %vm3726_vm8, %v5196_v53  ;;  %3050 = vmatpush.msk.msrb.mxu2 %vm3669_vm3, %v5196_v53 }
  0x74   : > { %822 = vmatmul.f32.gmra.mxu0 %v821_v5  ;;  %1579 = vmatpush.msrb.mxu3 %v992_v19  ;;  %v829_v19 = vand.u32 4294901760, %v828_v14  ;;  %597 = vst.msk [vmem:[#allocation2 + $0x40] sm:$0xff] %vm588_vm2, %v580_v26  ;;  %v3981_v5 = vand.u32 4294901760, %v756_v57 }
  0x75   : > { %3040 = vmatpush.msk.msrb.mxu1 %vm3731_vm9, %v5196_v53  ;;  %1595 = vmatpush.msra.mxu2 %v3711_v59  ;;  %v726_v59 = vld [vmem:[#allocation2 + $0x28] sm:$0xff] }
  0x76   : > { %1103 = vmatmul.f32.gmra.mxu2 %v826_v40  ;;  %3051 = vmatpush.msk.msra.mxu3 %vm3674_vm4, %v5196_v53  ;;  %v753_v32 = vsel %vm588_vm2, %v726_v59, 0  ;;  %v3209_v40 = vld [vmem:[%s3479_s8 + $0x28] sm:$0xff]  }
  0x77   : > { %1598 = vmatpush.msra.mxu2 %v3713_v60  ;;  %1328 = vmatpush.msrb.mxu0 %v3813_v30  ;;  %v836_v60 = vsub.f32 %v834_v17, %v835_v23  ;;  %v3962_v38 = vand.u32 4294901760, %v753_v32  ;;  %v3163_v58 = vunpack.c.l.bf16 %v3209_v40 }
  0x78   : > { %1211 = vmatmul.f32.gmra.mxu3 %v827_v9  ;;  %3041 = vmatpush.msk.msrb.mxu1 %vm3736_vm10, %v5196_v53  ;;  %v728_v9 = vld [vmem:[#allocation2 + $0x38] sm:$0xff] }
  0x79   : > { %3052 = vmatpush.msk.msra.mxu3 %vm3679_vm5, %v5196_v53  ;;  %1601 = vmatpush.msra.mxu2 %v3715_v61  ;;  %v533_v61 = vld [vmem:[#allocation2 + $0x48] sm:$0xff]  ;;  %v837_v27 = vand.u32 4294901760, %v836_v60  ;;  %v850_v34 = vsub.f32 %v753_v32, %v3962_v38  ;;  %v759_v14 = vsel %vm588_vm2, %v728_v9, 0  ;;  %v3210_v60 = vld [vmem:[%s3479_s8 + $0x30] sm:$0xff]  }
  0x7a   : > { %1003 = vmatmul.f32.gmra.mxu1 %v3878_v55  ;;  %1332 = vmatpush.msrb.mxu0 %v3831_v36  ;;  %v581_v37 = vadd.f32 %v3160_v33, %v533_v61  ;;  %v3987_v26 = vand.u32 4294901760, %v759_v14  ;;  %v3167_v32 = vunpack.c.l.bf16 %v3210_v60  ;;  %v536_v33 = vld [vmem:[#allocation2 + $0x60] sm:$0xff] }
  0x7b   : > { %3053 = vmatpush.msk.msra.mxu3 %vm3684_vm6, %v5196_v53  ;;  %3042 = vmatpush.msk.msrb.mxu1 %vm3669_vm3, %v5196_v53  ;;  %v851_v56 = vand.u32 4294901760, %v850_v34 }
  0x7c   : > { %830 = vmatmul.f32.gmra.mxu0 %v829_v19  ;;  %1604 = vmatpush.msra.mxu2 %v3717_v62  ;;  %v843_v62 = vand.u32 4294901760, %v842_v31  ;;  %598 = vst.msk [vmem:[#allocation2 + $0x48] sm:$0xff] %vm588_vm2, %v581_v37  ;;  %v729_v19 = vld [vmem:[#allocation2 + $0x40] sm:$0xff]  ;;  %v866_v59 = vsub.f32 %v759_v14, %v3987_v26  ;;  %v584_v61 = vadd.f32 %v3167_v32, %v536_v33  ;;  %v3211_v14 = vld [vmem:[%s3479_s8 + $0x38] sm:$0xff]  }
  0x7d   : > { %3054 = vmatpush.msk.msra.mxu3 %vm3689_vm7, %v5196_v53  ;;  %v852_v7 = vsub.f32 %v850_v34, %v851_v56  ;;  %v3172_v33 = vunpack.c.h.bf16 %v3211_v14 }
  0x7e   : > { %1108 = vmatmul.f32.gmra.mxu2 %v834_v17  ;;  %v3164_v17 = vunpack.c.h.bf16 %v3209_v40  ;;  %601 = vst.msk [vmem:[#allocation2 + $0x60] sm:$0xff] %vm588_vm2, %v584_v61  ;;  %v539_v61 = vld [vmem:[#allocation2 + $0x78] sm:$0xff] }
  0x7f   : > { %1607 = vmatpush.msra.mxu2 %v3762_v8  ;;  %3055 = vmatpush.msk.msra.mxu3 %vm3726_vm8, %v5196_v53  ;;  %v844_v8 = vsub.f32 %v842_v31, %v843_v62  ;;  %v853_v22 = vand.u32 4294901760, %v852_v7 }
  0x80   : > { %1217 = vmatmul.f32.gmra.mxu3 %v835_v23  ;;  %v583_v21 = vadd.f32 %v3164_v17, %v535_v20  ;;  %v3171_v20 = vunpack.c.l.bf16 %v3211_v14 }
  0x81   : > { %1610 = vmatpush.msra.mxu2 %v3780_v15  ;;  %3056 = vmatpush.msk.msra.mxu3 %vm3731_vm9, %v5196_v53  ;;  %v534_v15 = vld [vmem:[#allocation2 + $0x50] sm:$0xff]  ;;  %v845_v2 = vand.u32 4294901760, %v844_v8 }
  0x82   : > { %1007 = vmatmul.f32.gmra.mxu1 %v3905_v11  ;;  %600 = vst.msk [vmem:[#allocation2 + $0x58] sm:$0xff] %vm588_vm2, %v583_v21  ;;  %v538_v21 = vld [vmem:[#allocation2 + $0x70] sm:$0xff] }
  0x83   : > { %1613 = vmatpush.msra.mxu2 %v3788_v16  ;;  %3057 = vmatpush.msk.msra.mxu3 %vm3736_vm10, %v5196_v53  ;;  %v582_v16 = vadd.f32 %v3163_v58, %v534_v15  ;;  %v730_v39 = vld [vmem:[#allocation2 + $0x48] sm:$0xff] }
  0x84   : > { %838 = vmatmul.f32.gmra.mxu0 %v837_v27  ;;  %v867_v27 = vand.u32 4294901760, %v866_v59  ;;  %v765_v40 = vsel %vm588_vm2, %v730_v39, 0  ;;  %v537_v58 = vld [vmem:[#allocation2 + $0x68] sm:$0xff] }
  0x85   : > { %1616 = vmatpush.msra.mxu2 %v3796_v25  ;;  %3058 = vmatpush.msk.msra.mxu3 %vm3669_vm3, %v5196_v53  ;;  %599 = vst.msk [vmem:[#allocation2 + $0x50] sm:$0xff] %vm588_vm2, %v582_v16  ;;  %v858_v25 = vsub.f32 %v756_v57, %v3981_v5  ;;  %v3168_v57 = vunpack.c.h.bf16 %v3210_v60 }
  0x86   : > { %1113 = vmatmul.f32.gmra.mxu2 %v842_v31  ;;  %v762_v31 = vsel %vm588_vm2, %v729_v19, 0  ;;  %v868_v8 = vsub.f32 %v866_v59, %v867_v27 }
  0x87   : > { %v859_v13 = vand.u32 4294901760, %v858_v25  ;;  %v585_v15 = vadd.f32 %v3168_v57, %v537_v58 }
  0x88   : > { %1223 = vmatmul.f32.gmra.mxu3 %v843_v62  ;;  %v3994_v62 = vand.u32 4294901760, %v762_v31  ;;  %v869_v16 = vand.u32 4294901760, %v868_v8 }
  0x89   : > { %v860_v23 = vsub.f32 %v858_v25, %v859_v13  ;;  %602 = vst.msk [vmem:[#allocation2 + $0x68] sm:$0xff] %vm588_vm2, %v585_v15 }
  0x8a   : > { %1011 = vmatmul.f32.gmra.mxu1 %v3934_v28 }
  0x8b   : > { %v861_v37 = vand.u32 4294901760, %v860_v23 }
  0x8c   : > { %846 = vmatmul.f32.gmra.mxu0 %v845_v2  ;;  %v731_v9 = vld [vmem:[#allocation2 + $0x50] sm:$0xff] }
  0x8d   : > { %v768_v17 = vsel %vm588_vm2, %v731_v9, 0 }
  0x8e   : > { %1118 = vmatmul.f32.gmra.mxu2 %v850_v34  ;;  %v874_v34 = vsub.f32 %v762_v31, %v3994_v62  ;;  %v4007_v23 = vand.u32 4294901760, %v768_v17 }
  0x90   : > { %1229 = vmatmul.f32.gmra.mxu3 %v851_v56  ;;  %v875_v2 = vand.u32 4294901760, %v874_v34  ;;  %v4000_v56 = vand.u32 4294901760, %v765_v40  ;;  %v890_v31 = vsub.f32 %v768_v17, %v4007_v23  ;;  %v734_v9 = vld [vmem:[#allocation2 + $0x68] sm:$0xff] }
  0x91   : > { %v777_v14 = vsel %vm588_vm2, %v734_v9, 0 }
  0x92   : > { %1015 = vmatmul.f32.gmra.mxu1 %v3962_v38  ;;  %v876_v7 = vsub.f32 %v874_v34, %v875_v2  ;;  %v891_v39 = vand.u32 4294901760, %v890_v31 }
  0x94   : > { %854 = vmatmul.f32.gmra.mxu0 %v853_v22  ;;  %v586_v22 = vadd.f32 %v3171_v20, %v538_v21  ;;  %v4024_v21 = vand.u32 4294901760, %v777_v14 }
  0x96   : > { %1123 = vmatmul.f32.gmra.mxu2 %v858_v25  ;;  %v882_v25 = vsub.f32 %v765_v40, %v4000_v56  ;;  %603 = vst.msk [vmem:[#allocation2 + $0x70] sm:$0xff] %vm588_vm2, %v586_v22  ;;  %v892_v40 = vsub.f32 %v890_v31, %v891_v39 }
  0x98   : > { %1235 = vmatmul.f32.gmra.mxu3 %v859_v13  ;;  %v877_v13 = vand.u32 4294901760, %v876_v7  ;;  %v883_v19 = vand.u32 4294901760, %v882_v25  ;;  %v893_v15 = vand.u32 4294901760, %v892_v40 }
  0x9a   : > { %1019 = vmatmul.f32.gmra.mxu1 %v3981_v5  ;;  %v884_v60 = vsub.f32 %v882_v25, %v883_v19 }
  0x9c   : > { %862 = vmatmul.f32.gmra.mxu0 %v861_v37  ;;  %v587_v37 = vadd.f32 %v3172_v33, %v539_v61 }
  0x9d   : > { %v735_v22 = vld [vmem:[#allocation2 + $0x70] sm:$0xff] }
  0x9e   : > { %1128 = vmatmul.f32.gmra.mxu2 %v866_v59  ;;  %v732_v59 = vld [vmem:[#allocation2 + $0x58] sm:$0xff]  ;;  %604 = vst.msk [vmem:[#allocation2 + $0x78] sm:$0xff] %vm588_vm2, %v587_v37 }
  0x9f   : > { %v771_v32 = vsel %vm588_vm2, %v732_v59, 0  ;;  %v780_v59 = vsel %vm588_vm2, %v735_v22, 0 }
  0xa0   : > { %1241 = vmatmul.f32.gmra.mxu3 %v867_v27  ;;  %v885_v27 = vand.u32 4294901760, %v884_v60  ;;  %v4013_v8 = vand.u32 4294901760, %v771_v32 }
  0xa2   : > { %1023 = vmatmul.f32.gmra.mxu1 %v3987_v26  ;;  %v898_v57 = vsub.f32 %v771_v32, %v4013_v8  ;;  %v4029_v32 = vand.u32 4294901760, %v780_v59 }
  0xa4   : > { %870 = vmatmul.f32.gmra.mxu0 %v869_v16  ;;  %v899_v16 = vand.u32 4294901760, %v898_v57  ;;  %v922_v37 = vsub.f32 %v780_v59, %v4029_v32 }
  0xa5   : > { %v736_v33 = vld [vmem:[#allocation2 + $0x78] sm:$0xff] }
  0xa6   : > { %1133 = vmatmul.f32.gmra.mxu2 %v874_v34  ;;  %v733_v34 = vld [vmem:[#allocation2 + $0x60] sm:$0xff]  ;;  %v900_v7 = vsub.f32 %v898_v57, %v899_v16 }
  0xa7   : > { %v774_v58 = vsel %vm588_vm2, %v733_v34, 0 }
  0xa8   : > { %1247 = vmatmul.f32.gmra.mxu3 %v875_v2  ;;  %v4019_v2 = vand.u32 4294901760, %v774_v58  ;;  %v901_v17 = vand.u32 4294901760, %v900_v7 }
  0xaa   : > { %1027 = vmatmul.f32.gmra.mxu1 %v3994_v62 }
  0xac   : > { %878 = vmatmul.f32.gmra.mxu0 %v877_v13 }
  0xae   : > { %1138 = vmatmul.f32.gmra.mxu2 %v882_v25  ;;  %v906_v25 = vsub.f32 %v774_v58, %v4019_v2 }
  0xb0   : > { %1253 = vmatmul.f32.gmra.mxu3 %v883_v19  ;;  %v907_v20 = vand.u32 4294901760, %v906_v25  ;;  %v914_v19 = vsub.f32 %v777_v14, %v4024_v21 }
  0xb2   : > { %1031 = vmatmul.f32.gmra.mxu1 %v4000_v56  ;;  %v908_v13 = vsub.f32 %v906_v25, %v907_v20 }
  0xb4   : > { %886 = vmatmul.f32.gmra.mxu0 %v885_v27  ;;  %v909_v60 = vand.u32 4294901760, %v908_v13  ;;  %v1487_v27 = vld [vmem:[%s3489_s29] sm:$0xff]  ;;  %s2873_s29 = scalar_lea.hbm %s5183_s9, %s3430_s13 }
  0xb5   : > { %v1489_v34 = vsel %vm588_vm2, %v1487_v27, 0  ;;  %s2877_s22 = sshll.u32 %s2873_s29, 4  ;;  %s2878_s22 = int_to_ptr.hbm [resolvable:$true] %s2877_s22 }
  0xb6   : > { %1143 = vmatmul.f32.gmra.mxu2 %v890_v31  ;;  %v915_v31 = vand.u32 4294901760, %v914_v19  ;;  %v4047_v9 = vand.u32 4294901760, %v1489_v34  ;;  %s3302_s28 = sshra.s32 %s2878_s22, 4  ;;  %s3303_s28 = int_to_ptr.hbm [resolvable:$true] %s3302_s28 }
  0xb7   : > { %s3304_s16 = scalar_lea.hbm %s3303_s28, 1  ;;  %p3309_p7 = scmp.lt.s32.totalorder %s3303_s28, %s5183_s9 }
  0xb8   : > { %1259 = vmatmul.f32.gmra.mxu3 %v891_v39  ;;  %v916_v61 = vsub.f32 %v914_v19, %v915_v31  ;;  %v783_v39 = vsel %vm588_vm2, %v736_v33, 0  ;;  %v4076_v59 = vsub.f32 %v1489_v34, %v4047_v9  ;;  %p3305_p2 = scmp.ne.s32.totalorder %s3303_s28, %s3304_s16  ;;  %p3310_p8 = scmp.lt.s32.totalorder %s3308_s26, %s3304_s16 }
  0xb9   : > { %v4036_v58 = vand.u32 4294901760, %v783_v39 }
  0xba   : > { %1035 = vmatmul.f32.gmra.mxu1 %v4007_v23  ;;  %v917_v40 = vand.u32 4294901760, %v916_v61  ;;  %v3174_v61 = vld [vmem:[%s3484_s15] sm:$0xff]   ;;  %v5289_v51 = vand.u32 4294901760, %v4076_v59  ;;  %p3306_p3 = pnand %p3305_p2, %p3447_p5  ;;  %p3311_p9 = por %p3310_p8, %p3309_p7 }
  0xbc   : > { %894 = vmatmul.f32.gmra.mxu0 %v893_v15  ;;  %v1730_v15 = vadd.s32 72, %v3638_v35  ;;  %p3307_p4 = pneg %p3306_p3 }
  0xbe   : > { %1148 = vmatmul.f32.gmra.mxu2 %v898_v57  ;;  %v923_v57 = vand.u32 4294901760, %v922_v37  ;;  %p3312_p10 = pnand %p3311_p9, %p3307_p4 }
  0xc0   : > { %1265 = vmatmul.f32.gmra.mxu3 %v899_v16  ;;  %v4044_v16 = vld [vmem:[%s5258_s18] ss:$0 sm:$0xff] }
  0xc1   : > { %vm4050_vm11 = vcmp.eq.s32.totalorder %v1730_v15, %v4044_v16  ;;  %vm4082_vm13 = vcmp.eq.s32.totalorder %v3648_v41, %v4044_v16  ;;  %vm4098_vm14 = vcmp.eq.s32.totalorder %v3651_v42, %v4044_v16  ;;  %v3175_v15 = vunpack.c.l.bf16 %v3174_v61 }
  0xc2   : > { %1039 = vmatmul.f32.gmra.mxu1 %v4013_v8  ;;  %v3076_v14 = vsel %vm4050_vm11, 1.0, %v3358_v54  ;;  %v3074_v33 = vsel %vm4082_vm13, 1.0, %v3358_v54  ;;  %v3073_v34 = vsel %vm4098_vm14, 1.0, %v3358_v54  ;;  %vm4116_vm15 = vcmp.eq.s32.totalorder %v3654_v43, %v4044_v16 }
  0xc3   : > { %3087 = vmatpush.msk.msra.mxu1 %vm4050_vm11, %v5196_v53  ;;  %v4062_v22 = vsub.f32 %v3076_v14, %v3076_v14  ;;  %v4112_v42 = vsub.f32 %v3073_v34, %v3073_v34  ;;  %vm4130_vm1 = vcmp.eq.s32.totalorder %v3657_v44, %v4044_v16  ;;  %v5269_v43 = vmov 0 }
  0xc4   : > { %902 = vmatmul.f32.gmra.mxu0 %v901_v17  ;;  %v924_v17 = vsub.f32 %v922_v37, %v923_v57  ;;  %v5270_v43 = vsel %vm4130_vm1, 4294967295, %v5269_v43  ;;  %v3071_v34 = vsel %vm4130_vm1, 1.0, %v3358_v54  ;;  %vm4144_vm2 = vcmp.eq.s32.totalorder %v3660_v45, %v4044_v16 }
  0xc5   : > { %2120 = vmatpush.msra.mxu0 %v4062_v22  ;;  %v5271_v44 = vmov 0 }
  0xc6   : > { %1153 = vmatmul.f32.gmra.mxu2 %v906_v25  ;;  %v1729_v25 = vadd.s32 64, %v3638_v35  ;;  %v5272_v44 = vsel %vm4144_vm2, 4294967295, %v5271_v44 }
  0xc8   : > { %1271 = vmatmul.f32.gmra.mxu3 %v907_v20  ;;  %v930_v20 = vsub.f32 %v783_v39, %v4036_v58  ;;  %vm4065_vm12 = vcmp.eq.s32.totalorder %v1729_v25, %v4044_v16  ;;  %v4094_v39 = vsub.f32 %v3074_v33, %v3074_v33  ;;  %v5267_v25 = vmov 0 }
  0xc9   : > { %3088 = vmatpush.msk.msra.mxu1 %vm4065_vm12, %v5196_v53  ;;  %v5268_v25 = vsel %vm4116_vm15, 4294967295, %v5267_v25 }
  0xca   : > { %1043 = vmatmul.f32.gmra.mxu1 %v4019_v2  ;;  %v931_v27 = vand.u32 4294901760, %v930_v20 }
  0xcb   : > { %3089 = vmatpush.msk.msra.mxu1 %vm4082_vm13, %v5196_v53 }
  0xcc   : > { %910 = vmatmul.f32.gmra.mxu0 %v909_v60 }
  0xcd   : > { %3090 = vmatpush.msk.msra.mxu1 %vm4098_vm14, %v5196_v53 }
  0xce   : > { %1158 = vmatmul.f32.gmra.mxu2 %v914_v19  ;;  %v3075_v19 = vsel %vm4065_vm12, 1.0, %v3358_v54 }
  0xcf   : > { %v4078_v60 = vsub.f32 %v3075_v19, %v3075_v19  ;;  %v3072_v19 = vsel %vm4116_vm15, 1.0, %v3358_v54  ;;  %3091 = vmatpush.msk.msra.mxu1 %vm4116_vm15, %v5196_v53  ;;  %vm5280_vm15 = vcmask 654336  }
  0xd0   : > { %1277 = vmatmul.f32.gmra.mxu3 %v915_v31  ;;  %v4126_v33 = vsub.f32 %v3072_v19, %v3072_v19 }
  0xd1   : > { %2123 = vmatpush.msra.mxu0 %v4078_v60  ;;  %3092 = vmatpush.msk.msra.mxu1 %vm4130_vm1, %v5196_v53  ;;  %vm4178_vm1 = vcmp.eq.s32.totalorder %v3666_v47, %v4044_v16 }
  0xd2   : > { %1047 = vmatmul.f32.gmra.mxu1 %v4024_v21 }
  0xd3   : > { %2126 = vmatpush.msra.mxu0 %v4094_v39  ;;  %3093 = vmatpush.msk.msra.mxu1 %vm4144_vm2, %v5196_v53 }
  0xd4   : > { %918 = vmatmul.f32.gmra.mxu0 %v917_v40  ;;  %v605_v40 = vld [vmem:[#allocation3] sm:$0xff] }
  0xd5   : > { %v653_v14 = vadd.f32 %v3175_v15, %v605_v40  ;;  %2129 = vmatpush.msra.mxu0 %v4112_v42  ;;  %v4151_v40 = vsub.f32 %v3071_v34, %v3071_v34  ;;  %v4174_v34 = vand.u32 4294901760, %v4062_v22 }
  0xd6   : > { %1163 = vmatmul.f32.gmra.mxu2 %v922_v37  ;;  %v925_v37 = vand.u32 4294901760, %v924_v17  ;;  %v932_v17 = vsub.f32 %v930_v20, %v931_v27 }
  0xd7   : > { %670 = vst.msk [vmem:[#allocation3] sm:$0xff] %vm5188_vm0, %v653_v14  ;;  %2132 = vmatpush.msra.mxu0 %v4126_v33  ;;  %vm4159_vm0 = vcmp.eq.s32.totalorder %v3663_v46, %v4044_v16  ;;  %v3176_v14 = vunpack.c.h.bf16 %v3174_v61 }
  0xd8   : > { %1283 = vmatmul.f32.gmra.mxu3 %v923_v57  ;;  %v5191_v57 = vand.u32 4294901760, %v4076_v59  ;;  %v933_v15 = vand.u32 4294901760, %v932_v17  ;;  %v3069_v17 = vsel %vm4159_vm0, 1.0, %v3358_v54  ;;  %5275 = vst [vmem:[#allocation14_spill] sm:$0xff] %v4174_v34  ;;  %3094 = vmatpush.msk.msra.mxu1 %vm4159_vm0, %v5196_v53 }
  0xd9   : > { %2135 = vmatpush.msra.mxu0 %v4151_v40 }
  0xda   : > { %1051 = vmatmul.f32.gmra.mxu1 %v4029_v32 }
  0xdb   : > { %3095 = vmatpush.msk.msra.mxu1 %vm4178_vm1, %v5196_v53 }
  0xdc   : > { %926 = vmatmul.f32.gmra.mxu0 %v925_v37  ;;  %v1518_v37 = vsub.f32 %v4076_v59, %v5191_v57 }
  0xde   : > { %1168 = vmatmul.f32.gmra.mxu2 %v930_v20  ;;  %v3070_v20 = vsel %vm4144_vm2, 1.0, %v3358_v54  ;;  %v1519_v46 = vand.u32 4294901760, %v1518_v37  ;;  %v3068_v37 = vsel %vm4178_vm1, 1.0, %v3358_v54  ;;  %vm4193_vm2 = vcmp.eq.s32.totalorder %v3638_v35, %v4044_v16  ;;  %v3212_v16 = vld [vmem:[%s3484_s15 + $0x8] sm:$0xff]  }
  0xdf   : > { %v4167_v19 = vsub.f32 %v3070_v20, %v3070_v20  ;;  %v4185_v20 = vsub.f32 %v3069_v17, %v3069_v17  ;;  %v3067_v17 = vsel %vm4193_vm2, 1.0, %v3358_v54  ;;  %v1990_v35 = vsub.f32 %v4062_v22, %v4174_v34  ;;  %3096 = vmatpush.msk.msra.mxu1 %vm4193_vm2, %v5196_v53 }
  0xe0   : > { %1289 = vmatmul.f32.gmra.mxu3 %v931_v27  ;;  %v606_v27 = vld [vmem:[#allocation3 + $0x8] sm:$0xff]  ;;  %v4215_v54 = vsub.f32 %v3067_v17, %v3067_v17  ;;  %v4230_v17 = vand.u32 4294901760, %v4078_v60 }
  0xe1   : > { %v654_v57 = vadd.f32 %v3176_v14, %v606_v27  ;;  %2138 = vmatpush.msra.mxu0 %v4167_v19  ;;  %v4198_v14 = vsub.f32 %v3068_v37, %v3068_v37  ;;  %v1991_v37 = vand.u32 4294901760, %v1990_v35 }
  0xe2   : > { %1055 = vmatmul.f32.gmra.mxu1 %v4036_v58  ;;  %5284 = vst [vmem:[#allocation18_spill] sm:$0xff] %v4230_v17 }
  0xe3   : > { %671 = vst.msk [vmem:[#allocation3 + $0x8] sm:$0xff] %vm5280_vm15, %v654_v57  ;;  %2141 = vmatpush.msra.mxu0 %v4185_v20  ;;  %v3179_v57 = vunpack.c.l.bf16 %v3212_v16 }
  0xe4   : > { %934 = vmatmul.f32.gmra.mxu0 %v933_v15 }
  0xe5   : > { %2144 = vmatpush.msra.mxu0 %v4198_v14 }
  0xe6   : > { %1520 = vmatmul.f32.vlgmr.msrb.gmra.mxu2 %v1519_v46  ;;  %v607_v46 = vld [vmem:[#allocation3 + $0x10] sm:$0xff] }
  0xe7   : > { %v4207_v15 = vpop.f32.mrf.mxu1  ;;  %1665 = vmatpush.msrb.mxu2 %v3745_v3  ;;  %2147 = vmatpush.msra.mxu0 %v4215_v54 }
  0xe8   : > { %5281 = vst [vmem:[#allocation15_spill] sm:$0xff] %v4207_v15  ;;  %1581 = vmatmul.f32.vlgmr.msrb.gmra.mxu3 %v4047_v9  ;;  %v4220_v27 = vpop.f32.mrf.mxu0  ;;  %v4226_v3 = vpop.f32.mrf.mxu2  ;;  %v655_v15 = vadd.f32 %v3179_v57, %v607_v46 }
  0xe9   : > { %5282 = vst [vmem:[#allocation16_spill] sm:$0xff] %v4220_v27  ;;  %3059 = vmatpush.msk.msrb.mxu3 %vm3674_vm4, %v5196_v53  ;;  %1669 = vmatpush.msrb.mxu2 %v3748_v4  ;;  %v4241_v4 = vand.u32 4294901760, %v4094_v39  ;;  %vm5287_vm4 = vmmov %vm5280_vm15 }
  0xea   : > { %5283 = vst [vmem:[#allocation17_spill] sm:$0xff] %v4226_v3  ;;  %1423 = vmatmul.f32.vlgmr.msrb.gmra.mxu1 %v3858_v12 }
  0xeb   : > { %3060 = vmatpush.msk.msrb.mxu3 %vm3679_vm5, %v5196_v53  ;;  %v4236_v49 = vpop.f32.mrf.mxu3  ;;  %1673 = vmatpush.msrb.mxu2 %v3754_v6  ;;  %5286 = vst [vmem:[#allocation20_spill] sm:$0xff] %v4241_v4  ;;  %v1996_v6 = vsub.f32 %v4078_v60, %v4230_v17  ;;  %vm5294_vm5 = vmmov %vm5287_vm4 }
  0xec   : > { %5285 = vst [vmem:[#allocation19_spill] sm:$0xff] %v4236_v49  ;;  %1334 = vmatmul.f32.vlgmr.msrb.gmra.mxu0 %v3858_v12  ;;  %2604 = vmatpush.msrb.mxu1 %v1991_v37  ;;  %v1762_v12 = vld [vmem:[#allocation3] sm:$0xff] }
  0xed   : > { %672 = vst.msk [vmem:[#allocation3 + $0x10] sm:$0xff] %vm5287_vm4, %v655_v15  ;;  %3061 = vmatpush.msk.msrb.mxu3 %vm3684_vm6, %v5196_v53  ;;  %1677 = vmatpush.msrb.mxu2 %v3768_v10  ;;  %v2002_v10 = vsub.f32 %v4094_v39, %v4241_v4  ;;  %v3180_v15 = vunpack.c.h.bf16 %v3212_v16  ;;  %v1997_v16 = vand.u32 4294901760, %v1996_v6  ;;  %v4291_v6 = vand.u32 4294901760, %v4126_v33  ;;  %vm5296_vm6 = vmmov %vm5287_vm4 }
  0xee   : > { %1619 = vmatmul.f32.vlgmr.msra.gmra.mxu2 %v4076_v59  ;;  %3107 = vmatpush.msk.msrb.mxu0 %vm4050_vm11, %v5196_v53  ;;  %v608_v59 = vld [vmem:[#allocation3 + $0x18] sm:$0xff] }
  0xef   : > { %v4249_v50 = vpop.f32.mrf.mxu1  ;;  %3062 = vmatpush.msk.msrb.mxu3 %vm3689_vm7, %v5196_v53  ;;  %1681 = vmatpush.msrb.mxu2 %v3791_v18  ;;  %v4276_v18 = vand.u32 4294901760, %v4112_v42  ;;  %v656_v57 = vadd.f32 %v3180_v15, %v608_v59  ;;  %v2003_v46 = vand.u32 4294901760, %v2002_v10  ;;  %5295 = vst [vmem:[#allocation26_spill] sm:$0xff] %v4291_v6  ;;  %v4321_v10 = vand.u32 4294901760, %v4167_v19 }
  0xf0   : > { %5288 = vst [vmem:[#allocation21_spill] sm:$0xff] %v4249_v50  ;;  %1650 = vmatmul.f32.vlgmr.msra.gmra.mxu3 %v5289_v51  ;;  %3108 = vmatpush.msk.msrb.mxu0 %vm4065_vm12, %v5196_v53  ;;  %v4273_v52 = vpop.f32.mrf.mxu2  ;;  %v3183_v15 = vunpack.c.l.bf16 %v3213_v1  ;;  %vm5305_vm7 = vnez %v5268_v25 }
  0xf1   : > { %v4267_v35 = vpop.f32.mrf.mxu0  ;;  %3063 = vmatpush.msk.msrb.mxu3 %vm3726_vm8, %v5196_v53  ;;  %1685 = vmatpush.msrb.mxu2 %v3809_v29  ;;  %5291 = vst [vmem:[#allocation23_spill] sm:$0xff] %v4273_v52  ;;  %v1779_v29 = vsel %vm5294_vm5, %v1762_v12, 0  ;;  %v2008_v0 = vsub.f32 %v4112_v42, %v4276_v18  ;;  %v1763_v12 = vld [vmem:[#allocation3 + $0x8] sm:$0xff]  ;;  %v2026_v49 = vsub.f32 %v4167_v19, %v4321_v10 }
  0xf2   : > { %5290 = vst [vmem:[#allocation22_spill] sm:$0xff] %v4267_v35  ;;  %1427 = vmatmul.f32.gmra.mxu1 %v3868_v24  ;;  %3109 = vmatpush.msk.msrb.mxu0 %vm4082_vm13, %v5196_v53  ;;  %v4308_v51 = vand.u32 4294901760, %v1779_v29 }
  0xf3   : > { %5292 = vst [vmem:[#allocation24_spill] sm:$0xff] %v4276_v18  ;;  %3064 = vmatpush.msk.msrb.mxu3 %vm3731_vm9, %v5196_v53  ;;  %v4285_v63 = vpop.f32.mrf.mxu3  ;;  %1689 = vmatpush.msrb.mxu2 %v3813_v30  ;;  %vm5310_vm9 = vnez %v5270_v43 }
  0xf4   : > { %5293 = vst [vmem:[#allocation25_spill] sm:$0xff] %v4285_v63  ;;  %1338 = vmatmul.f32.gmra.mxu0 %v3868_v24  ;;  %2610 = vmatpush.msrb.mxu1 %v1997_v16  ;;  %v4306_v24 = vand.u32 4294901760, %v4151_v40 }
  0xf5   : > { %673 = vst.msk [vmem:[#allocation3 + $0x18] sm:$0xff] %vm5296_vm6, %v656_v57  ;;  %3065 = vmatpush.msk.msrb.mxu3 %vm3736_vm10, %v5196_v53  ;;  %1693 = vmatpush.msrb.mxu2 %v3831_v36  ;;  %v2014_v36 = vsub.f32 %v4126_v33, %v4291_v6  ;;  %v2009_v57 = vand.u32 4294901760, %v2008_v0  ;;  %vm5311_vm10 = vnez %v5272_v44 }
  0xf6   : > { %5298 = vst [vmem:[#allocation28_spill] sm:$0xff] %v4306_v24  ;;  %2616 = vmatpush.msrb.mxu1 %v2003_v46  ;;  %1695 = vmatmul.f32.vlgmr.msrb.gmra.mxu2 %v4047_v9 }
  0xf7   : > { %3077 = vmatpush.msk.msra.mxu2 %vm4050_vm11, %v5196_v53  ;;  %v4303_v30 = vpop.f32.mrf.mxu1  ;;  %3066 = vmatpush.msk.msrb.mxu3 %vm3669_vm3, %v5196_v53  ;;  %5299 = vst [vmem:[#allocation29_spill] sm:$0xff] %v4321_v10  ;;  %vm5304_vm3 = vmmov %vm5287_vm4  ;;  %v2015_v63 = vand.u32 4294901760, %v2014_v36 }
  0xf8   : > { %5297 = vst [vmem:[#allocation27_spill] sm:$0xff] %v4303_v30  ;;  %1724 = vmatmul.f32.vlgmr.msrb.gmra.mxu3 %v4047_v9  ;;  %3110 = vmatpush.msk.msrb.mxu0 %vm4098_vm14, %v5196_v53  ;;  %v2020_v30 = vsub.f32 %v4151_v40, %v4306_v24  ;;  %v4340_v9 = vsub.f32 %v1779_v29, %v4308_v51  ;;  %v4353_v29 = vand.u32 4294901760, %v4198_v14  ;;  %vm5307_vm8 = vmmov %vm5304_vm3 }
  0xf9   : > { %1992 = vmatpush.msra.mxu3 %v1991_v37  ;;  %3078 = vmatpush.msk.msra.mxu2 %vm4065_vm12, %v5196_v53  ;;  %v4323_v59 = vpop.f32.mrf.mxu0  ;;  %v4326_v48 = vpop.f32.mrf.mxu2  ;;  %v609_v37 = vld [vmem:[#allocation3 + $0x20] sm:$0xff]  ;;  %vm5316_vm15 = vmmov %vm5304_vm3 }
  0xfa   : > { %5300 = vst [vmem:[#allocation30_spill] sm:$0xff] %v4323_v59  ;;  %v4337_v59 = vand.u32 4294901760, %v4185_v20  ;;  %v657_v0 = vadd.f32 %v3183_v15, %v609_v37  ;;  %1431 = vmatmul.f32.gmra.mxu1 %v3878_v55  ;;  %3111 = vmatpush.msk.msrb.mxu0 %vm5305_vm7, %v5196_v53  ;;  %vm5317_vm4 = vmmov %vm5304_vm3  ;;  %v5432_v7 = vld [vmem:[#allocation24_spill] sm:$0xff] }
  0xfb   : > { %5301 = vst [vmem:[#allocation31_spill] sm:$0xff] %v4326_v48  ;;  %1998 = vmatpush.msra.mxu3 %v1997_v16  ;;  %3079 = vmatpush.msk.msra.mxu2 %vm4082_vm13, %v5196_v53  ;;  %v4342_v48 = vpop.f32.mrf.mxu3  ;;  %v1782_v16 = vsel %vm5304_vm3, %v1763_v12, 0  ;;  %v4360_v12 = vand.u32 4294901760, %v4215_v54  ;;  %vm5322_vm5 = vmmov %vm5304_vm3 }
  0xfc   : > { %5302 = vst [vmem:[#allocation32_spill] sm:$0xff] %v4337_v59  ;;  %1342 = vmatmul.f32.gmra.mxu0 %v3878_v55  ;;  %2622 = vmatpush.msrb.mxu1 %v2009_v57  ;;  %v2021_v55 = vand.u32 4294901760, %v2020_v30  ;;  %v2032_v36 = vsub.f32 %v4185_v20, %v4337_v59  ;;  %v4367_v37 = vand.u32 4294901760, %v1782_v16  ;;  %v2027_v30 = vand.u32 4294901760, %v2026_v49  ;;  %vm5324_vm6 = vmmov %vm5304_vm3 }
  0xfd   : > { %5303 = vst [vmem:[#allocation33_spill] sm:$0xff] %v4342_v48  ;;  %2004 = vmatpush.msra.mxu3 %v2003_v46  ;;  %3080 = vmatpush.msk.msra.mxu2 %vm4098_vm14, %v5196_v53  ;;  %v2044_v49 = vsub.f32 %v4215_v54, %v4360_v12 }
  0xfe   : > { %5306 = vst [vmem:[#allocation34_spill] sm:$0xff] %v4353_v29  ;;  %3112 = vmatpush.msk.msrb.mxu0 %vm5310_vm9, %v5196_v53  ;;  %2628 = vmatpush.msrb.mxu1 %v2015_v63  ;;  %v2033_v52 = vand.u32 4294901760, %v2032_v36  ;;  %v4393_v50 = vsub.f32 %v1782_v16, %v4367_v37 }
  0xff   : > { %674 = vst.msk [vmem:[#allocation3 + $0x20] sm:$0xff] %vm5307_vm8, %v657_v0  ;;  %2010 = vmatpush.msra.mxu3 %v2009_v57  ;;  %v4362_v46 = vpop.f32.mrf.mxu1  ;;  %3081 = vmatpush.msk.msra.mxu2 %vm5305_vm7, %v5196_v53  ;;  %v2038_v57 = vsub.f32 %v4198_v14, %v4353_v29  ;;  %v1764_v0 = vld [vmem:[#allocation3 + $0x10] sm:$0xff]  ;;  %vm5329_vm8 = vmmov %vm5304_vm3 }
 0x100   : > { %5308 = vst [vmem:[#allocation35_spill] sm:$0xff] %v4360_v12  ;;  %3113 = vmatpush.msk.msrb.mxu0 %vm5311_vm10, %v5196_v53  ;;  %2634 = vmatpush.msrb.mxu1 %v2021_v55 }
 0x101   : > { %5309 = vst [vmem:[#allocation36_spill] sm:$0xff] %v4362_v46  ;;  %2016 = vmatpush.msra.mxu3 %v2015_v63  ;;  %v3184_v46 = vunpack.c.h.bf16 %v3213_v1  ;;  %v4380_v15 = vpop.f32.mrf.mxu0  ;;  %3082 = vmatpush.msk.msra.mxu2 %vm5310_vm9, %v5196_v53  ;;  %v4385_v48 = vpop.f32.mrf.mxu2  ;;  %v610_v63 = vld [vmem:[#allocation3 + $0x28] sm:$0xff]  ;;  %v5314_v1 = vand.u32 4294901760, %v4340_v9  ;;  %v2039_v16 = vand.u32 4294901760, %v2038_v57 }
 0x102   : > { %5312 = vst [vmem:[#allocation37_spill] sm:$0xff] %v4380_v15  ;;  %3114 = vmatpush.msk.msrb.mxu0 %vm4159_vm0, %v5196_v53  ;;  %1435 = vmatmul.f32.gmra.mxu1 %v3905_v11 }
 0x103   : > { %5313 = vst [vmem:[#allocation38_spill] sm:$0xff] %v4385_v48  ;;  %2022 = vmatpush.msra.mxu3 %v2021_v55  ;;  %v1855_v3 = vsub.f32 %v4340_v9, %v5314_v1  ;;  %v658_v15 = vadd.f32 %v3184_v46, %v610_v63  ;;  %v4398_v48 = vpop.f32.mrf.mxu3  ;;  %3083 = vmatpush.msk.msra.mxu2 %vm5311_vm10, %v5196_v53  ;;  %v1785_v55 = vsel %vm5316_vm15, %v1764_v0, 0  ;;  %v2045_v46 = vand.u32 4294901760, %v2044_v49  ;;  %v611_v0 = vld [vmem:[#allocation3 + $0x30] sm:$0xff]  ;;  %vm5335_vm15 = vmmov %vm5304_vm3 }
 0x104   : > { %5315 = vst [vmem:[#allocation39_spill] sm:$0xff] %v4398_v48  ;;  %1346 = vmatmul.f32.gmra.mxu0 %v3905_v11  ;;  %2640 = vmatpush.msrb.mxu1 %v2027_v30  ;;  %v5198_v1 = vand.u32 4294901760, %v4393_v50  ;;  %v4413_v48 = vand.u32 4294901760, %v1785_v55  ;;  %v3214_v11 = vld [vmem:[%s3484_s15 + $0x18] sm:$0xff]  }
 0x105   : > { %2028 = vmatpush.msra.mxu3 %v2027_v30  ;;  %675 = vst.msk [vmem:[#allocation3 + $0x28] sm:$0xff] %vm5317_vm4, %v658_v15  ;;  %3084 = vmatpush.msk.msra.mxu2 %vm4159_vm0, %v5196_v53  ;;  %v1856_v36 = vand.u32 4294901760, %v1855_v3  ;;  %v1765_v15 = vld [vmem:[#allocation3 + $0x18] sm:$0xff]  ;;  %v3187_v30 = vunpack.c.l.bf16 %v3214_v11  ;;  %vm5336_vm4 = vmmov %vm5304_vm3 }
 0x106   : > { %3115 = vmatpush.msk.msrb.mxu0 %vm4178_vm1, %v5196_v53  ;;  %2646 = vmatpush.msrb.mxu1 %v2033_v52  ;;  %v4436_v49 = vsub.f32 %v1785_v55, %v4413_v48  ;;  %v5436_v25 = vld [vmem:[#allocation32_spill] sm:$0xff] }
 0x107   : > { %2034 = vmatpush.msra.mxu3 %v2033_v52  ;;  %v4410_v63 = vpop.f32.mrf.mxu1  ;;  %3085 = vmatpush.msk.msra.mxu2 %vm4178_vm1, %v5196_v53  ;;  %v1863_v52 = vsub.f32 %v4393_v50, %v5198_v1  ;;  %v612_v1 = vld [vmem:[#allocation3 + $0x38] sm:$0xff]  ;;  %v5438_v44 = vld [vmem:[#allocation35_spill] sm:$0xff] }
 0x108   : > { %5318 = vst [vmem:[#allocation40_spill] sm:$0xff] %v4410_v63  ;;  %3116 = vmatpush.msk.msrb.mxu0 %vm4193_vm2, %v5196_v53  ;;  %2652 = vmatpush.msrb.mxu1 %v2039_v16  ;;  %v659_v63 = vadd.f32 %v3187_v30, %v611_v0 }
 0x109   : > { %2040 = vmatpush.msra.mxu3 %v2039_v16  ;;  %v4425_v3 = vpop.f32.mrf.mxu0  ;;  %3086 = vmatpush.msk.msra.mxu2 %vm4193_vm2, %v5196_v53  ;;  %v4430_v57 = vpop.f32.mrf.mxu2  ;;  %v1788_v53 = vsel %vm5322_vm5, %v1765_v15, 0  ;;  %v5323_v16 = vmov 1.0   ;;  %v1864_v55 = vand.u32 4294901760, %v1863_v52  ;;  %v5199_v15 = vand.u32 4294901760, %v4436_v49  ;;  %vm5341_vm5 = vmmov %vm5304_vm3 }
 0x10a   : > { %5319 = vst [vmem:[#allocation41_spill] sm:$0xff] %v4425_v3  ;;  %1857 = vmatmul.f32.vlgmr.msra.gmra.mxu2 %v1856_v36  ;;  %1439 = vmatmul.f32.gmra.mxu1 %v3934_v28  ;;  %v4456_v30 = vand.u32 4294901760, %v1788_v53 }
 0x10b   : > { %5320 = vst [vmem:[#allocation42_spill] sm:$0xff] %v4430_v57  ;;  %2046 = vmatpush.msra.mxu3 %v2045_v46  ;;  %2361 = vmatpush.msrb.mxu2 %v4174_v34  ;;  %v4440_v3 = vpop.f32.mrf.mxu3 }
 0x10c   : > { %2048 = vmatmul.f32.vlgmr.msra.gmra.mxu3 %v4308_v51  ;;  %5321 = vst [vmem:[#allocation43_spill] sm:$0xff] %v4440_v3  ;;  %1350 = vmatmul.f32.gmra.mxu0 %v3934_v28  ;;  %v1766_v28 = vld [vmem:[#allocation3 + $0x20] sm:$0xff] }
 0x10d   : > { %3097 = vmatpush.msk.msrb.mxu3 %vm4050_vm11, %v5323_v16  ;;  %676 = vst.msk [vmem:[#allocation3 + $0x30] sm:$0xff] %vm5324_vm6, %v659_v63  ;;  %2365 = vmatpush.msrb.mxu2 %v4230_v17  ;;  %v3188_v63 = vunpack.c.h.bf16 %v3214_v11  ;;  %vm5342_vm6 = vmmov %vm5304_vm3 }
 0x10e   : > { %2658 = vmatpush.msrb.mxu1 %v2045_v46  ;;  %v1871_v46 = vsub.f32 %v4436_v49, %v5199_v15  ;;  %v1767_v15 = vld [vmem:[#allocation3 + $0x28] sm:$0xff] }
 0x10f   : > { %v4450_v36 = vpop.f32.mrf.mxu1  ;;  %3098 = vmatpush.msk.msrb.mxu3 %vm4065_vm12, %v5323_v16  ;;  %2369 = vmatpush.msrb.mxu2 %v4241_v4  ;;  %v660_v11 = vadd.f32 %v3188_v63, %v612_v1  ;;  %v3215_v63 = vld [vmem:[%s3484_s15 + $0x20] sm:$0xff]  }
 0x110   : > { %5325 = vst [vmem:[#allocation44_spill] sm:$0xff] %v4450_v36  ;;  %v4471_v36 = vsub.f32 %v1788_v53, %v4456_v30  ;;  %v1872_v53 = vand.u32 4294901760, %v1871_v46 }
 0x111   : > { %3099 = vmatpush.msk.msrb.mxu3 %vm4082_vm13, %v5323_v16  ;;  %v4462_v0 = vpop.f32.mrf.mxu0  ;;  %v4464_v52 = vpop.f32.mrf.mxu2  ;;  %2373 = vmatpush.msrb.mxu2 %v4276_v18  ;;  %677 = vst.msk [vmem:[#allocation3 + $0x38] sm:$0xff] %vm5329_vm8, %v660_v11  ;;  %v3191_v11 = vunpack.c.l.bf16 %v3215_v63  ;;  %vm5347_vm8 = vmmov %vm5304_vm3 }
 0x112   : > { %5326 = vst [vmem:[#allocation45_spill] sm:$0xff] %v4462_v0  ;;  %1865 = vmatmul.f32.gmra.mxu2 %v1864_v55  ;;  %v1791_v0 = vsel %vm5304_vm3, %v1766_v28, 0  ;;  %1443 = vmatmul.f32.gmra.mxu1 %v3962_v38  ;;  %v613_v55 = vld [vmem:[#allocation3 + $0x40] sm:$0xff] }
 0x113   : > { %5327 = vst [vmem:[#allocation46_spill] sm:$0xff] %v4464_v52  ;;  %3100 = vmatpush.msk.msrb.mxu3 %vm4098_vm14, %v5323_v16  ;;  %v4477_v52 = vpop.f32.mrf.mxu3  ;;  %2377 = vmatpush.msrb.mxu2 %v4291_v6  ;;  %v4491_v28 = vand.u32 4294901760, %v1791_v0  ;;  %v661_v57 = vadd.f32 %v3191_v11, %v613_v55  ;;  %v3192_v55 = vunpack.c.h.bf16 %v3215_v63 }
 0x114   : > { %2052 = vmatmul.f32.gmra.mxu3 %v4367_v37  ;;  %5328 = vst [vmem:[#allocation47_spill] sm:$0xff] %v4477_v52  ;;  %1354 = vmatmul.f32.gmra.mxu0 %v3962_v38 }
 0x115   : > { %3101 = vmatpush.msk.msrb.mxu3 %vm5305_vm7, %v5323_v16  ;;  %2381 = vmatpush.msrb.mxu2 %v4306_v24  ;;  %v4510_v3 = vsub.f32 %v1791_v0, %v4491_v28  ;;  %678 = vst.msk [vmem:[#allocation3 + $0x40] sm:$0xff] %vm5336_vm4, %v661_v57  ;;  %v1768_v57 = vld [vmem:[#allocation3 + $0x30] sm:$0xff]  ;;  %vm5354_vm4 = vmmov %vm5304_vm3 }
 0x116   : > { %v1797_v63 = vsel %vm5341_vm5, %v1768_v57, 0  ;;  %v615_v57 = vld [vmem:[#allocation3 + $0x50] sm:$0xff]  ;;  %vm5360_vm5 = vmmov %vm5304_vm3 }
 0x117   : > { %v4488_v1 = vpop.f32.mrf.mxu1  ;;  %3102 = vmatpush.msk.msrb.mxu3 %vm5310_vm9, %v5323_v16  ;;  %2385 = vmatpush.msrb.mxu2 %v4321_v10 }
 0x118   : > { %5330 = vst [vmem:[#allocation48_spill] sm:$0xff] %v4488_v1  ;;  %v5333_v1 = vand.u32 4294901760, %v4471_v36 }
 0x119   : > { %3103 = vmatpush.msk.msrb.mxu3 %vm5311_vm10, %v5323_v16  ;;  %v4501_v38 = vpop.f32.mrf.mxu0  ;;  %v4503_v46 = vpop.f32.mrf.mxu2  ;;  %2389 = vmatpush.msrb.mxu2 %v4337_v59 }
 0x11a   : > { %5331 = vst [vmem:[#allocation49_spill] sm:$0xff] %v4501_v38  ;;  %1873 = vmatmul.f32.gmra.mxu2 %v1872_v53  ;;  %v1879_v52 = vsub.f32 %v4471_v36, %v5333_v1  ;;  %1447 = vmatmul.f32.gmra.mxu1 %v3981_v5  ;;  %v5200_v1 = vand.u32 4294901760, %v4510_v3 }
 0x11b   : > { %5332 = vst [vmem:[#allocation50_spill] sm:$0xff] %v4503_v46  ;;  %3104 = vmatpush.msk.msrb.mxu3 %vm4159_vm0, %v5323_v16  ;;  %v4516_v38 = vpop.f32.mrf.mxu3  ;;  %v1794_v46 = vsel %vm5335_vm15, %v1767_v15, 0  ;;  %2393 = vmatpush.msrb.mxu2 %v4353_v29  ;;  %vm5353_vm15 = vmmov %vm5304_vm3 }
 0x11c   : > { %2056 = vmatmul.f32.gmra.mxu3 %v4413_v48  ;;  %5334 = vst [vmem:[#allocation51_spill] sm:$0xff] %v4516_v38  ;;  %1358 = vmatmul.f32.gmra.mxu0 %v3981_v5  ;;  %v1880_v0 = vand.u32 4294901760, %v1879_v52  ;;  %v4530_v15 = vand.u32 4294901760, %v1794_v46  ;;  %v614_v5 = vld [vmem:[#allocation3 + $0x48] sm:$0xff]  ;;  %v1887_v52 = vsub.f32 %v4510_v3, %v5200_v1 }
 0x11d   : > { %3105 = vmatpush.msk.msrb.mxu3 %vm4178_vm1, %v5323_v16  ;;  %2397 = vmatpush.msrb.mxu2 %v4360_v12  ;;  %v662_v35 = vadd.f32 %v3192_v55, %v614_v5  ;;  %v3216_v55 = vld [vmem:[%s3484_s15 + $0x28] sm:$0xff]   ;;  %v1769_v5 = vld [vmem:[#allocation3 + $0x38] sm:$0xff] }
 0x11e   : > { %v1800_v29 = vsel %vm5304_vm3, %v1769_v5, 0  ;;  %v616_v5 = vld [vmem:[#allocation3 + $0x58] sm:$0xff] }
 0x11f   : > { %v4527_v53 = vpop.f32.mrf.mxu1  ;;  %3106 = vmatpush.msk.msrb.mxu3 %vm4193_vm2, %v5323_v16  ;;  %679 = vst.msk [vmem:[#allocation3 + $0x48] sm:$0xff] %vm5342_vm6, %v662_v35  ;;  %vm5361_vm6 = vmmov %vm5304_vm3 }
 0x120   : > { %5337 = vst [vmem:[#allocation52_spill] sm:$0xff] %v4527_v53  ;;  %v4543_v53 = vsub.f32 %v1794_v46, %v4530_v15  ;;  %v4555_v46 = vand.u32 4294901760, %v1797_v63 }
 0x121   : > { %v4535_v11 = vpop.f32.mrf.mxu0  ;;  %v4537_v38 = vpop.f32.mrf.mxu2 }
 0x122   : > { %5338 = vst [vmem:[#allocation53_spill] sm:$0xff] %v4535_v11  ;;  %1881 = vmatmul.f32.gmra.mxu2 %v1880_v0  ;;  %1451 = vmatmul.f32.gmra.mxu1 %v3987_v26  ;;  %v1888_v0 = vand.u32 4294901760, %v1887_v52  ;;  %v5203_v1 = vand.u32 4294901760, %v4543_v53  ;;  %v3195_v11 = vunpack.c.l.bf16 %v3216_v55  ;;  %v4566_v35 = vsub.f32 %v1797_v63, %v4555_v46 }
 0x123   : > { %5339 = vst [vmem:[#allocation54_spill] sm:$0xff] %v4537_v38  ;;  %v4546_v27 = vpop.f32.mrf.mxu3  ;;  %v4578_v63 = vand.u32 4294901760, %v1800_v29 }
 0x124   : > { %2060 = vmatmul.f32.gmra.mxu3 %v4456_v30  ;;  %5340 = vst [vmem:[#allocation55_spill] sm:$0xff] %v4546_v27  ;;  %1362 = vmatmul.f32.gmra.mxu0 %v3987_v26  ;;  %v1895_v26 = vsub.f32 %v4543_v53, %v5203_v1  ;;  %v663_v52 = vadd.f32 %v3195_v11, %v615_v57  ;;  %v5204_v1 = vand.u32 4294901760, %v4566_v35  ;;  %v1770_v11 = vld [vmem:[#allocation3 + $0x40] sm:$0xff]  ;;  %v3196_v57 = vunpack.c.h.bf16 %v3216_v55 }
 0x125   : > { %5349 = vst [vmem:[#allocation61_spill] sm:$0xff] %v4578_v63  ;;  %v1803_v55 = vsel %vm5353_vm15, %v1770_v11, 0  ;;  %v617_v11 = vld [vmem:[#allocation3 + $0x60] sm:$0xff]  ;;  %vm5366_vm15 = vmmov %vm5304_vm3 }
 0x126   : > { %680 = vst.msk [vmem:[#allocation3 + $0x50] sm:$0xff] %vm5347_vm8, %v663_v52  ;;  %v664_v52 = vadd.f32 %v3196_v57, %v616_v5  ;;  %v3217_v57 = vld [vmem:[%s3484_s15 + $0x30] sm:$0xff]   ;;  %v1771_v5 = vld [vmem:[#allocation3 + $0x48] sm:$0xff]  ;;  %vm5363_vm8 = vmmov %vm5304_vm3 }
 0x127   : > { %v4552_v38 = vpop.f32.mrf.mxu1  ;;  %v1806_v10 = vsel %vm5360_vm5, %v1771_v5, 0  ;;  %v618_v5 = vld [vmem:[#allocation3 + $0x68] sm:$0xff]  ;;  %vm5372_vm5 = vmmov %vm5304_vm3 }
 0x128   : > { %5343 = vst [vmem:[#allocation56_spill] sm:$0xff] %v4552_v38 }
 0x129   : > { %v4558_v12 = vpop.f32.mrf.mxu0  ;;  %v4560_v27 = vpop.f32.mrf.mxu2  ;;  %681 = vst.msk [vmem:[#allocation3 + $0x58] sm:$0xff] %vm5354_vm4, %v664_v52  ;;  %vm5368_vm4 = vmmov %vm5304_vm3 }
 0x12a   : > { %5344 = vst [vmem:[#allocation57_spill] sm:$0xff] %v4558_v12  ;;  %1889 = vmatmul.f32.gmra.mxu2 %v1888_v0  ;;  %1455 = vmatmul.f32.gmra.mxu1 %v3994_v62  ;;  %v1896_v0 = vand.u32 4294901760, %v1895_v26  ;;  %v4588_v26 = vsub.f32 %v1800_v29, %v4578_v63  ;;  %v4600_v29 = vand.u32 4294901760, %v1803_v55 }
 0x12b   : > { %5345 = vst [vmem:[#allocation58_spill] sm:$0xff] %v4560_v27  ;;  %v4569_v38 = vpop.f32.mrf.mxu3 }
 0x12c   : > { %2064 = vmatmul.f32.gmra.mxu3 %v4491_v28  ;;  %5346 = vst [vmem:[#allocation59_spill] sm:$0xff] %v4569_v38  ;;  %1366 = vmatmul.f32.gmra.mxu0 %v3994_v62  ;;  %v1903_v62 = vsub.f32 %v4566_v35, %v5204_v1  ;;  %v5207_v1 = vand.u32 4294901760, %v4588_v26 }
 0x12d   : > { %5356 = vst [vmem:[#allocation66_spill] sm:$0xff] %v4600_v29 }
 0x12f   : > { %v4575_v27 = vpop.f32.mrf.mxu1 }
 0x130   : > { %5348 = vst [vmem:[#allocation60_spill] sm:$0xff] %v4575_v27 }
 0x131   : > { %v4580_v12 = vpop.f32.mrf.mxu0  ;;  %v4582_v38 = vpop.f32.mrf.mxu2 }
 0x132   : > { %5350 = vst [vmem:[#allocation62_spill] sm:$0xff] %v4580_v12  ;;  %1897 = vmatmul.f32.gmra.mxu2 %v1896_v0  ;;  %1459 = vmatmul.f32.gmra.mxu1 %v4000_v56  ;;  %v1904_v0 = vand.u32 4294901760, %v1903_v62  ;;  %v3199_v12 = vunpack.c.l.bf16 %v3217_v57  ;;  %v4611_v62 = vsub.f32 %v1803_v55, %v4600_v29  ;;  %v4623_v55 = vand.u32 4294901760, %v1806_v10 }
 0x133   : > { %5351 = vst [vmem:[#allocation63_spill] sm:$0xff] %v4582_v38  ;;  %v4591_v27 = vpop.f32.mrf.mxu3 }
 0x134   : > { %2068 = vmatmul.f32.gmra.mxu3 %v4530_v15  ;;  %5352 = vst [vmem:[#allocation64_spill] sm:$0xff] %v4591_v27  ;;  %1370 = vmatmul.f32.gmra.mxu0 %v4000_v56  ;;  %v1911_v56 = vsub.f32 %v4588_v26, %v5207_v1  ;;  %v665_v52 = vadd.f32 %v3199_v12, %v617_v11  ;;  %v5210_v1 = vand.u32 4294901760, %v4611_v62  ;;  %v1772_v12 = vld [vmem:[#allocation3 + $0x50] sm:$0xff]  ;;  %v3200_v11 = vunpack.c.h.bf16 %v3217_v57 }
 0x135   : > { %5362 = vst [vmem:[#allocation70_spill] sm:$0xff] %v4623_v55  ;;  %v1809_v57 = vsel %vm5304_vm3, %v1772_v12, 0  ;;  %v619_v12 = vld [vmem:[#allocation3 + $0x70] sm:$0xff] }
 0x136   : > { %682 = vst.msk [vmem:[#allocation3 + $0x60] sm:$0xff] %vm5361_vm6, %v665_v52  ;;  %v666_v52 = vadd.f32 %v3200_v11, %v618_v5  ;;  %v3218_v11 = vld [vmem:[%s3484_s15 + $0x38] sm:$0xff]   ;;  %vm5373_vm6 = vmmov %vm5304_vm3  ;;  %s2860_s15 = sld [smem:[#allocation4 + %s3430_s13]] }
 0x137   : > { %v4597_v38 = vpop.f32.mrf.mxu1  ;;  %v1773_v5 = vld [vmem:[#allocation3 + $0x58] sm:$0xff]  ;;  %v3203_v18 = vunpack.c.l.bf16 %v3218_v11 }
 0x138   : > { %5355 = vst [vmem:[#allocation65_spill] sm:$0xff] %v4597_v38  ;;  %v1812_v34 = vsel %vm5366_vm15, %v1773_v5, 0  ;;  %v620_v5 = vld [vmem:[#allocation3 + $0x78] sm:$0xff]  ;;  %vm5384_vm15 = vmmov %vm5304_vm3 }
 0x139   : > { %v4603_v59 = vpop.f32.mrf.mxu0  ;;  %v4605_v27 = vpop.f32.mrf.mxu2  ;;  %683 = vst.msk [vmem:[#allocation3 + $0x68] sm:$0xff] %vm5363_vm8, %v666_v52  ;;  %v667_v52 = vadd.f32 %v3203_v18, %v619_v12  ;;  %v3204_v12 = vunpack.c.h.bf16 %v3218_v11  ;;  %vm5381_vm8 = vmmov %vm5304_vm3 }
 0x13a   : > { %5357 = vst [vmem:[#allocation67_spill] sm:$0xff] %v4603_v59  ;;  %1905 = vmatmul.f32.gmra.mxu2 %v1904_v0  ;;  %1463 = vmatmul.f32.gmra.mxu1 %v4007_v23  ;;  %v1912_v0 = vand.u32 4294901760, %v1911_v56  ;;  %v4633_v56 = vsub.f32 %v1806_v10, %v4623_v55  ;;  %v4645_v10 = vand.u32 4294901760, %v1809_v57 }
 0x13b   : > { %5358 = vst [vmem:[#allocation68_spill] sm:$0xff] %v4605_v27  ;;  %v4614_v38 = vpop.f32.mrf.mxu3 }
 0x13c   : > { %2072 = vmatmul.f32.gmra.mxu3 %v4555_v46  ;;  %5359 = vst [vmem:[#allocation69_spill] sm:$0xff] %v4614_v38  ;;  %1374 = vmatmul.f32.gmra.mxu0 %v4007_v23  ;;  %v1919_v23 = vsub.f32 %v4611_v62, %v5210_v1  ;;  %v5217_v1 = vand.u32 4294901760, %v4633_v56 }
 0x13d   : > { %5364 = vst [vmem:[#allocation71_spill] sm:$0xff] %v4645_v10  ;;  %v1774_v18 = vld [vmem:[#allocation3 + $0x60] sm:$0xff] }
 0x13e   : > { %684 = vst.msk [vmem:[#allocation3 + $0x70] sm:$0xff] %vm5368_vm4, %v667_v52  ;;  %vm5421_vm4 = vmmov %vm5304_vm3 }
 0x13f   : > { %v4620_v27 = vpop.f32.mrf.mxu1 }
 0x141   : > { %v4625_v59 = vpop.f32.mrf.mxu0  ;;  %v4627_v38 = vpop.f32.mrf.mxu2 }
 0x142   : > { %1913 = vmatmul.f32.gmra.mxu2 %v1912_v0  ;;  %1467 = vmatmul.f32.gmra.mxu1 %v4013_v8  ;;  %v1920_v0 = vand.u32 4294901760, %v1919_v23  ;;  %v4656_v23 = vsub.f32 %v1809_v57, %v4645_v10  ;;  %v4668_v57 = vand.u32 4294901760, %v1812_v34 }
 0x143   : > { %v4636_v24 = vpop.f32.mrf.mxu3 }
 0x144   : > { %2076 = vmatmul.f32.gmra.mxu3 %v4578_v63  ;;  %1378 = vmatmul.f32.gmra.mxu0 %v4013_v8  ;;  %v1927_v8 = vsub.f32 %v4633_v56, %v5217_v1  ;;  %v5220_v1 = vand.u32 4294901760, %v4656_v23  ;;  %5370 = vst [vmem:[#allocation75_spill] sm:$0xff] %v4668_v57  ;;  %v4676_v52 = vsub.f32 %v1812_v34, %v4668_v57 }
 0x146   : > { %v5223_v34 = vand.u32 4294901760, %v4676_v52 }
 0x147   : > { %v4642_v6 = vpop.f32.mrf.mxu1 }
 0x149   : > { %v4648_v4 = vpop.f32.mrf.mxu0  ;;  %v4650_v17 = vpop.f32.mrf.mxu2 }
 0x14a   : > { %5365 = vst [vmem:[#allocation72_spill] sm:$0xff] %v4650_v17  ;;  %1921 = vmatmul.f32.gmra.mxu2 %v1920_v0  ;;  %1471 = vmatmul.f32.gmra.mxu1 %v4019_v2  ;;  %v1928_v0 = vand.u32 4294901760, %v1927_v8 }
 0x14b   : > { %v4661_v63 = vpop.f32.mrf.mxu3 }
 0x14c   : > { %2080 = vmatmul.f32.gmra.mxu3 %v4600_v29  ;;  %1382 = vmatmul.f32.gmra.mxu0 %v4019_v2  ;;  %5367 = vst [vmem:[#allocation73_spill] sm:$0xff] %v4661_v63  ;;  %v1935_v63 = vsub.f32 %v4656_v23, %v5220_v1  ;;  %v668_v2 = vadd.f32 %v3204_v12, %v620_v5  ;;  %v1775_v5 = vld [vmem:[#allocation3 + $0x68] sm:$0xff] }
 0x14e   : > { %685 = vst.msk [vmem:[#allocation3 + $0x78] sm:$0xff] %vm5373_vm6, %v668_v2 }
 0x14f   : > { %v4665_v17 = vpop.f32.mrf.mxu1 }
 0x150   : > { %5369 = vst [vmem:[#allocation74_spill] sm:$0xff] %v4665_v17  ;;  %v1815_v17 = vsel %vm5372_vm5, %v1774_v18, 0  ;;  %v1943_v18 = vsub.f32 %v4676_v52, %v5223_v34 }
 0x151   : > { %v4670_v29 = vpop.f32.mrf.mxu0  ;;  %v4679_v8 = vpop.f32.mrf.mxu2  ;;  %v4690_v12 = vand.u32 4294901760, %v1815_v17 }
 0x152   : > { %1929 = vmatmul.f32.gmra.mxu2 %v1928_v0  ;;  %5371 = vst [vmem:[#allocation76_spill] sm:$0xff] %v4679_v8  ;;  %1475 = vmatmul.f32.gmra.mxu1 %v4024_v21  ;;  %v1936_v0 = vand.u32 4294901760, %v1935_v63 }
 0x153   : > { %v4685_v11 = vpop.f32.mrf.mxu3  ;;  %v4698_v2 = vsub.f32 %v1815_v17, %v4690_v12  ;;  %v1776_v17 = vld [vmem:[#allocation3 + $0x70] sm:$0xff] }
 0x154   : > { %2084 = vmatmul.f32.gmra.mxu3 %v4623_v55  ;;  %1386 = vmatmul.f32.gmra.mxu0 %v4024_v21  ;;  %5374 = vst [vmem:[#allocation77_spill] sm:$0xff] %v4685_v11  ;;  %v1818_v21 = vsel %vm5304_vm3, %v1775_v5, 0 }
 0x155   : > { %v4709_v11 = vand.u32 4294901760, %v1818_v21 }
 0x157   : > { %v4687_v1 = vpop.f32.mrf.mxu1 }
 0x158   : > { %5375 = vst [vmem:[#allocation78_spill] sm:$0xff] %v4687_v1  ;;  %v1944_v1 = vand.u32 4294901760, %v1943_v18 }
 0x159   : > { %v4692_v55 = vpop.f32.mrf.mxu0  ;;  %v4703_v63 = vpop.f32.mrf.mxu2 }
 0x15a   : > { %5376 = vst [vmem:[#allocation79_spill] sm:$0xff] %v4692_v55  ;;  %1937 = vmatmul.f32.gmra.mxu2 %v1936_v0  ;;  %1479 = vmatmul.f32.gmra.mxu1 %v4029_v32  ;;  %v5226_v0 = vand.u32 4294901760, %v4698_v2 }
 0x15b   : > { %5377 = vst [vmem:[#allocation80_spill] sm:$0xff] %v4703_v63  ;;  %v4711_v34 = vpop.f32.mrf.mxu3 }
 0x15c   : > { %2088 = vmatmul.f32.gmra.mxu3 %v4645_v10  ;;  %1390 = vmatmul.f32.gmra.mxu0 %v4029_v32  ;;  %5379 = vst [vmem:[#allocation82_spill] sm:$0xff] %v4711_v34  ;;  %v1951_v5 = vsub.f32 %v4698_v2, %v5226_v0  ;;  %v4719_v10 = vsub.f32 %v1818_v21, %v4709_v11  ;;  %v1821_v32 = vsel %vm5381_vm8, %v1776_v17, 0  ;;  %v1777_v0 = vld [vmem:[#allocation3 + $0x78] sm:$0xff] }
 0x15e   : > { %v1952_v18 = vand.u32 4294901760, %v1951_v5  ;;  %v1824_v5 = vsel %vm5384_vm15, %v1777_v0, 0 }
 0x15f   : > { %v4706_v55 = vpop.f32.mrf.mxu1 }
 0x160   : > { %5378 = vst [vmem:[#allocation81_spill] sm:$0xff] %v4706_v55  ;;  %v5231_v55 = vand.u32 4294901760, %v4719_v10 }
 0x161   : > { %v4713_v8 = vpop.f32.mrf.mxu0 }
 0x162   : > { %5380 = vst [vmem:[#allocation83_spill] sm:$0xff] %v4713_v8  ;;  %1945 = vmatmul.f32.gmra.mxu2 %v1944_v1  ;;  %1483 = vmatmul.f32.gmra.mxu1 %v4036_v58  ;;  %v4726_v8 = vand.u32 4294901760, %v1821_v32  ;;  %v4728_v1 = vpop.f32.mrf.mxu2  ;;  %v1959_v17 = vsub.f32 %v4719_v10, %v5231_v55  ;;  %v5396_v55 = vand.u32 4294901760, %v4543_v53 }
 0x163   : > { %v4734_v63 = vpop.f32.mrf.mxu3 }
 0x164   : > { %2092 = vmatmul.f32.gmra.mxu3 %v4668_v57  ;;  %1394 = vmatmul.f32.gmra.mxu0 %v4036_v58  ;;  %v4740_v58 = vsub.f32 %v1821_v32, %v4726_v8  ;;  %v4749_v57 = vand.u32 4294901760, %v1824_v5 }
 0x166   : > { %v4769_v0 = vsub.f32 %v1824_v5, %v4749_v57 }
 0x167   : > { %v4730_v34 = vpop.f32.mrf.mxu1 }
 0x168   : > { %5382 = vst [vmem:[#allocation84_spill] sm:$0xff] %v4730_v34  ;;  %v5385_v34 = vand.u32 4294901760, %v4340_v9 }
 0x169   : > { %v4732_v21 = vpop.f32.mrf.mxu0 }
 0x16a   : > { %5383 = vst [vmem:[#allocation85_spill] sm:$0xff] %v4732_v21  ;;  %1953 = vmatmul.f32.gmra.mxu2 %v1952_v18  ;;  %2258 = vmatmul.f32.vlgmr.msra.gmra.mxu1 %v5385_v34  ;;  %v1960_v21 = vand.u32 4294901760, %v1959_v17  ;;  %v5230_v18 = vand.u32 4294901760, %v4740_v58  ;;  %v5229_v17 = vand.u32 4294901760, %v4769_v0 }
 0x16b   : > { %3117 = vmatpush.msk.msra.mxu1 %vm4050_vm11, %v5323_v16 }
 0x16c   : > { %2096 = vmatmul.f32.gmra.mxu3 %v4690_v12  ;;  %2150 = vmatmul.f32.vlgmr.msra.gmra.mxu0 %v4340_v9  ;;  %v4760_v9 = vpop.f32.mrf.mxu2  ;;  %v1967_v34 = vsub.f32 %v4740_v58, %v5230_v18 }
 0x16d   : > { %2672 = vmatpush.msra.mxu0 %v4062_v22  ;;  %3118 = vmatpush.msk.msra.mxu1 %vm4065_vm12, %v5323_v16  ;;  %5386 = vst [vmem:[#allocation86_spill] sm:$0xff] %v4760_v9 }
 0x16f   : > { %v4754_v32 = vpop.f32.mrf.mxu1  ;;  %2675 = vmatpush.msra.mxu0 %v4078_v60  ;;  %3119 = vmatpush.msk.msra.mxu1 %vm4082_vm13, %v5323_v16  ;;  %v4776_v60 = vpop.f32.mrf.mxu3 }
 0x170   : > { %5387 = vst [vmem:[#allocation87_spill] sm:$0xff] %v4776_v60 }
 0x171   : > { %v4762_v22 = vpop.f32.mrf.mxu0  ;;  %2678 = vmatpush.msra.mxu0 %v4094_v39  ;;  %3120 = vmatpush.msk.msra.mxu1 %vm4098_vm14, %v5323_v16  ;;  %v5388_v39 = vand.u32 4294901760, %v4393_v50 }
 0x172   : > { %1961 = vmatmul.f32.gmra.mxu2 %v1960_v21  ;;  %v1968_v21 = vand.u32 4294901760, %v1967_v34 }
 0x173   : > { %2681 = vmatpush.msra.mxu0 %v4112_v42  ;;  %2264 = vmatmul.f32.gmra.mxu1 %v5388_v39 }
 0x174   : > { %2100 = vmatmul.f32.gmra.mxu3 %v4709_v11  ;;  %2155 = vmatmul.f32.gmra.mxu0 %v4393_v50 }
 0x175   : > { %2684 = vmatpush.msra.mxu0 %v4126_v33  ;;  %3121 = vmatpush.msk.msra.mxu1 %vm5305_vm7, %v5323_v16  ;;  %v1975_v33 = vsub.f32 %v4769_v0, %v5229_v17 }
 0x177   : > { %2687 = vmatpush.msra.mxu0 %v4151_v40  ;;  %v4790_v42 = vpop.f32.mrf.mxu1  ;;  %3122 = vmatpush.msk.msra.mxu1 %vm5310_vm9, %v5323_v16  ;;  %v4804_v40 = vpop.f32.mrf.mxu2  ;;  %v1976_v34 = vand.u32 4294901760, %v1975_v33 }
 0x178   : > { %5389 = vst [vmem:[#allocation88_spill] sm:$0xff] %v4804_v40  ;;  %v4808_v50 = vpop.f32.mrf.mxu3 }
 0x179   : > { %v4795_v5 = vpop.f32.mrf.mxu0  ;;  %2690 = vmatpush.msra.mxu0 %v4167_v19  ;;  %3123 = vmatpush.msk.msra.mxu1 %vm5311_vm10, %v5323_v16  ;;  %5390 = vst [vmem:[#allocation89_spill] sm:$0xff] %v4808_v50  ;;  %v5391_v19 = vand.u32 4294901760, %v4436_v49 }
 0x17a   : > { %1969 = vmatmul.f32.gmra.mxu2 %v1968_v21 }
 0x17b   : > { %2693 = vmatpush.msra.mxu0 %v4185_v20  ;;  %3124 = vmatpush.msk.msra.mxu1 %vm4159_vm0, %v5323_v16 }
 0x17c   : > { %2104 = vmatmul.f32.gmra.mxu3 %v4726_v8  ;;  %2160 = vmatmul.f32.gmra.mxu0 %v4436_v49  ;;  %v5393_v49 = vand.u32 4294901760, %v4471_v36 }
 0x17d   : > { %2270 = vmatmul.f32.gmra.mxu1 %v5391_v19  ;;  %2696 = vmatpush.msra.mxu0 %v4198_v14 }
 0x17e   : > { %3125 = vmatpush.msk.msra.mxu1 %vm4178_vm1, %v5323_v16 }
 0x17f   : > { %2699 = vmatpush.msra.mxu0 %v4215_v54  ;;  %v4821_v20 = vpop.f32.mrf.mxu1  ;;  %v4830_v14 = vpop.f32.mrf.mxu2 }
 0x180   : > { %3126 = vmatpush.msk.msra.mxu1 %vm4193_vm2, %v5323_v16  ;;  %5392 = vst [vmem:[#allocation90_spill] sm:$0xff] %v4830_v14  ;;  %v4834_v21 = vpop.f32.mrf.mxu3 }
 0x181   : > { %v4826_v39 = vpop.f32.mrf.mxu0  ;;  %5394 = vst [vmem:[#allocation91_spill] sm:$0xff] %v4834_v21 }
 0x182   : > { %1977 = vmatmul.f32.gmra.mxu2 %v1976_v34  ;;  %v5395_v34 = vand.u32 4294901760, %v4510_v3 }
 0x184   : > { %2108 = vmatmul.f32.gmra.mxu3 %v4749_v57  ;;  %2165 = vmatmul.f32.gmra.mxu0 %v4471_v36 }
 0x185   : > { %2276 = vmatmul.f32.gmra.mxu1 %v5393_v49 }
 0x187   : > { %v4839_v33 = vpop.f32.mrf.mxu1 }
 0x189   : > { %v4836_v54 = vpop.f32.mrf.mxu0 }
 0x18a   : > { %2399 = vmatmul.f32.vlgmr.msrb.gmra.mxu2 %v4308_v51 }
 0x18c   : > { %2490 = vmatmul.f32.vlgmr.msrb.gmra.mxu3 %v4308_v51  ;;  %2170 = vmatmul.f32.gmra.mxu0 %v4510_v3 }
 0x18d   : > { %v1858_v19 = vpop.f32.mrf.mxu2  ;;  %2282 = vmatmul.f32.gmra.mxu1 %v5395_v34 }
 0x18f   : > { %v2049_v17 = vpop.f32.mrf.mxu3  ;;  %v4850_v49 = vpop.f32.mrf.mxu1 }
 0x190   : > { %v4845_v18 = vadd.f32 %v2049_v17, %v1858_v19  ;;  %v5397_v19 = vand.u32 4294901760, %v4566_v35 }
 0x191   : > { %v4847_v36 = vpop.f32.mrf.mxu0 }
 0x192   : > { %2403 = vmatmul.f32.gmra.mxu2 %v4367_v37 }
 0x194   : > { %2494 = vmatmul.f32.gmra.mxu3 %v4367_v37  ;;  %2175 = vmatmul.f32.gmra.mxu0 %v4543_v53 }
 0x195   : > { %v1866_v51 = vpop.f32.mrf.mxu2  ;;  %2288 = vmatmul.f32.gmra.mxu1 %v5396_v55 }
 0x197   : > { %v2053_v21 = vpop.f32.mrf.mxu3  ;;  %v4861_v17 = vpop.f32.mrf.mxu1 }
 0x198   : > { %v4856_v3 = vadd.f32 %v2053_v21, %v1866_v51  ;;  %v5398_v51 = vand.u32 4294901760, %v4588_v26 }
 0x199   : > { %v4858_v34 = vpop.f32.mrf.mxu0 }
 0x19a   : > { %2407 = vmatmul.f32.gmra.mxu2 %v4413_v48 }
 0x19c   : > { %2498 = vmatmul.f32.gmra.mxu3 %v4413_v48  ;;  %2180 = vmatmul.f32.gmra.mxu0 %v4566_v35 }
 0x19d   : > { %v1874_v37 = vpop.f32.mrf.mxu2  ;;  %2294 = vmatmul.f32.gmra.mxu1 %v5397_v19 }
 0x19f   : > { %v2057_v14 = vpop.f32.mrf.mxu3  ;;  %v4872_v21 = vpop.f32.mrf.mxu1 }
 0x1a0   : > { %v4867_v53 = vadd.f32 %v2057_v14, %v1874_v37  ;;  %v5399_v37 = vand.u32 4294901760, %v4611_v62 }
 0x1a1   : > { %v4869_v55 = vpop.f32.mrf.mxu0 }
 0x1a2   : > { %2411 = vmatmul.f32.gmra.mxu2 %v4456_v30 }
 0x1a4   : > { %2502 = vmatmul.f32.gmra.mxu3 %v4456_v30  ;;  %2185 = vmatmul.f32.gmra.mxu0 %v4588_v26 }
 0x1a5   : > { %v1882_v48 = vpop.f32.mrf.mxu2  ;;  %2300 = vmatmul.f32.gmra.mxu1 %v5398_v51 }
 0x1a7   : > { %v2061_v50 = vpop.f32.mrf.mxu3  ;;  %v4883_v14 = vpop.f32.mrf.mxu1 }
 0x1a8   : > { %v4878_v35 = vadd.f32 %v2061_v50, %v1882_v48  ;;  %v5401_v48 = vand.u32 4294901760, %v4633_v56 }
 0x1a9   : > { %v4880_v19 = vpop.f32.mrf.mxu0 }
 0x1aa   : > { %2415 = vmatmul.f32.gmra.mxu2 %v4491_v28 }
 0x1ac   : > { %2506 = vmatmul.f32.gmra.mxu3 %v4491_v28  ;;  %2190 = vmatmul.f32.gmra.mxu0 %v4611_v62 }
 0x1ad   : > { %v1890_v30 = vpop.f32.mrf.mxu2  ;;  %2306 = vmatmul.f32.gmra.mxu1 %v5399_v37 }
 0x1af   : > { %v2065_v40 = vpop.f32.mrf.mxu3  ;;  %v4894_v50 = vpop.f32.mrf.mxu1 }
 0x1b0   : > { %v4889_v26 = vadd.f32 %v2065_v40, %v1890_v30  ;;  %5400 = vst [vmem:[#allocation92_spill] sm:$0xff] %v4894_v50  ;;  %v1041_v40 = vadd.f32 %v4620_v27, %v4625_v59  ;;  %v1045_v59 = vadd.f32 %v4642_v6, %v4648_v4  ;;  %v5409_v4 = vld [vmem:[#allocation73_spill] sm:$0xff]  ;;  %v5411_v50 = vld [vmem:[#allocation66_spill] sm:$0xff] }
 0x1b1   : > { %v4891_v51 = vpop.f32.mrf.mxu0 }
 0x1b2   : > { %2419 = vmatmul.f32.gmra.mxu2 %v4530_v15 }
 0x1b4   : > { %2510 = vmatmul.f32.gmra.mxu3 %v4530_v15  ;;  %2195 = vmatmul.f32.gmra.mxu0 %v4633_v56  ;;  %v1150_v15 = vadd.f32 %v4627_v38, %v1041_v40  ;;  %v5406_v38 = vld [vmem:[#allocation72_spill] sm:$0xff] }
 0x1b5   : > { %v1898_v28 = vpop.f32.mrf.mxu2  ;;  %2312 = vmatmul.f32.gmra.mxu1 %v5401_v48  ;;  %v5404_v48 = vand.u32 4294901760, %v4656_v23  ;;  %v1155_v40 = vadd.f32 %v5406_v38, %v1045_v59 }
 0x1b6   : > { %v1267_v27 = vadd.f32 %v4636_v24, %v1150_v15 }
 0x1b7   : > { %v2069_v60 = vpop.f32.mrf.mxu3  ;;  %v4907_v37 = vpop.f32.mrf.mxu1  ;;  %v1273_v6 = vadd.f32 %v5409_v4, %v1155_v40  ;;  %v5414_v40 = vand.u32 4294901760, %v4698_v2  ;;  %v5416_v4 = vld [vmem:[#allocation79_spill] sm:$0xff] }
 0x1b8   : > { %v4900_v62 = vadd.f32 %v2069_v60, %v1898_v28  ;;  %5403 = vst [vmem:[#allocation94_spill] sm:$0xff] %v4907_v37 }
 0x1b9   : > { %v4904_v30 = vpop.f32.mrf.mxu0 }
 0x1ba   : > { %5402 = vst [vmem:[#allocation93_spill] sm:$0xff] %v4904_v30  ;;  %2423 = vmatmul.f32.gmra.mxu2 %v4555_v46  ;;  %v5405_v30 = vld [vmem:[#allocation61_spill] sm:$0xff] }
 0x1bc   : > { %2514 = vmatmul.f32.gmra.mxu3 %v4555_v46  ;;  %2200 = vmatmul.f32.gmra.mxu0 %v4656_v23 }
 0x1bd   : > { %v1906_v56 = vpop.f32.mrf.mxu2  ;;  %2318 = vmatmul.f32.gmra.mxu1 %v5404_v48  ;;  %v5408_v48 = vand.u32 4294901760, %v4676_v52 }
 0x1bf   : > { %v2073_v60 = vpop.f32.mrf.mxu3  ;;  %v1468_v46 = vpop.f32.mrf.mxu1 }
 0x1c0   : > { %v4914_v28 = vadd.f32 %v2073_v60, %v1906_v56 }
 0x1c1   : > { %v1379_v9 = vpop.f32.mrf.mxu0 }
 0x1c2   : > { %v1380_v37 = vadd.f32 %v1379_v9, %v1267_v27  ;;  %2427 = vmatmul.f32.gmra.mxu2 %v5405_v30  ;;  %v5410_v9 = vld [vmem:[#allocation74_spill] sm:$0xff] }
 0x1c3   : > { %v1049_v60 = vadd.f32 %v5410_v9, %v4670_v29 }
 0x1c4   : > { %2518 = vmatmul.f32.gmra.mxu3 %v5405_v30  ;;  %2205 = vmatmul.f32.gmra.mxu0 %v4676_v52  ;;  %v4923_v23 = vadd.f32 %v1468_v46, %v1380_v37  ;;  %v5412_v37 = vld [vmem:[#allocation76_spill] sm:$0xff] }
 0x1c5   : > { %v1914_v56 = vpop.f32.mrf.mxu2  ;;  %2324 = vmatmul.f32.gmra.mxu1 %v5408_v48  ;;  %v1160_v46 = vadd.f32 %v5412_v37, %v1049_v60  ;;  %v5415_v48 = vld [vmem:[#allocation77_spill] sm:$0xff] }
 0x1c6   : > { %5407 = vst [vmem:[#allocation61_spill] sm:$0xff] %v4923_v23  ;;  %v5418_v23 = vld [vmem:[#allocation70_spill] sm:$0xff] }
 0x1c7   : > { %v2077_v24 = vpop.f32.mrf.mxu3  ;;  %v1472_v59 = vpop.f32.mrf.mxu1 }
 0x1c8   : > { %v4927_v15 = vadd.f32 %v2077_v24, %v1914_v56  ;;  %v1279_v24 = vadd.f32 %v5415_v48, %v1160_v46  ;;  %v5420_v46 = vand.u32 4294901760, %v4719_v10 }
 0x1c9   : > { %v1383_v27 = vpop.f32.mrf.mxu0 }
 0x1ca   : > { %v1384_v30 = vadd.f32 %v1383_v27, %v1273_v6  ;;  %2431 = vmatmul.f32.gmra.mxu2 %v5411_v50  ;;  %v5417_v6 = vld [vmem:[#allocation78_spill] sm:$0xff] }
 0x1cb   : > { %v1053_v9 = vadd.f32 %v5417_v6, %v5416_v4  ;;  %v5423_v6 = vld [vmem:[#allocation83_spill] sm:$0xff] }
 0x1cc   : > { %2522 = vmatmul.f32.gmra.mxu3 %v5411_v50  ;;  %2210 = vmatmul.f32.gmra.mxu0 %v4698_v2  ;;  %v4936_v52 = vadd.f32 %v1472_v59, %v1384_v30  ;;  %v2554_v30 = vld [vmem:[%s3494_s21] sm:$0xff]  ;;  %v5419_v59 = vld [vmem:[#allocation80_spill] sm:$0xff] }
 0x1cd   : > { %v1922_v38 = vpop.f32.mrf.mxu2  ;;  %2330 = vmatmul.f32.gmra.mxu1 %v5414_v40  ;;  %v1165_v37 = vadd.f32 %v5419_v59, %v1053_v9  ;;  %v2556_v40 = vsel %vm5421_vm4, %v2554_v30, 0 }
 0x1ce   : > { %5413 = vst [vmem:[#allocation72_spill] sm:$0xff] %v4936_v52  ;;  %v4960_v52 = vand.u32 4294901760, %v2556_v40 }
 0x1cf   : > { %v2081_v56 = vpop.f32.mrf.mxu3  ;;  %v1476_v60 = vpop.f32.mrf.mxu1 }
 0x1d0   : > { %v4940_v29 = vadd.f32 %v2081_v56, %v1922_v38 }
 0x1d1   : > { %v1387_v27 = vpop.f32.mrf.mxu0 }
 0x1d2   : > { %v1388_v50 = vadd.f32 %v1387_v27, %v1279_v24  ;;  %2435 = vmatmul.f32.gmra.mxu2 %v5418_v23  ;;  %v5422_v24 = vld [vmem:[#allocation82_spill] sm:$0xff] }
 0x1d3   : > { %v1285_v4 = vadd.f32 %v5422_v24, %v1165_v37  ;;  %v2585_v37 = vsub.f32 %v2556_v40, %v4960_v52 }
 0x1d4   : > { %2526 = vmatmul.f32.gmra.mxu3 %v5418_v23  ;;  %2215 = vmatmul.f32.gmra.mxu0 %v4719_v10  ;;  %v4950_v2 = vadd.f32 %v1476_v60, %v1388_v50  ;;  %v5424_v23 = vld [vmem:[#allocation81_spill] sm:$0xff]  ;;  %v5425_v50 = vld [vmem:[#allocation71_spill] sm:$0xff] }
 0x1d5   : > { %v1930_v38 = vpop.f32.mrf.mxu2  ;;  %2336 = vmatmul.f32.gmra.mxu1 %v5420_v46  ;;  %v1057_v27 = vadd.f32 %v5424_v23, %v5423_v6  ;;  %v5426_v46 = vand.u32 4294901760, %v4740_v58  ;;  %v2586_v6 = vand.u32 4294901760, %v2585_v37 }
 0x1d7   : > { %v2085_v56 = vpop.f32.mrf.mxu3  ;;  %v1480_v60 = vpop.f32.mrf.mxu1  ;;  %v1170_v10 = vadd.f32 %v4728_v1, %v1057_v27  ;;  %v2587_v27 = vsub.f32 %v2585_v37, %v2586_v6 }
 0x1d8   : > { %v4955_v48 = vadd.f32 %v2085_v56, %v1930_v38 }
 0x1d9   : > { %v1391_v9 = vpop.f32.mrf.mxu0 }
 0x1da   : > { %v1392_v59 = vadd.f32 %v1391_v9, %v1285_v4  ;;  %2439 = vmatmul.f32.gmra.mxu2 %v5425_v50  ;;  %v1291_v4 = vadd.f32 %v4734_v63, %v1170_v10  ;;  %v2588_v63 = vand.u32 4294901760, %v2587_v27 }
 0x1dc   : > { %2530 = vmatmul.f32.gmra.mxu3 %v5425_v50  ;;  %2220 = vmatmul.f32.gmra.mxu0 %v4740_v58  ;;  %v4966_v30 = vadd.f32 %v1480_v60, %v1392_v59  ;;  %v5427_v50 = vld [vmem:[#allocation75_spill] sm:$0xff]  ;;  %v5428_v59 = vand.u32 4294901760, %v4769_v0 }
 0x1dd   : > { %v1938_v38 = vpop.f32.mrf.mxu2  ;;  %2342 = vmatmul.f32.gmra.mxu1 %v5426_v46 }
 0x1df   : > { %v2089_v56 = vpop.f32.mrf.mxu3  ;;  %v1484_v1 = vpop.f32.mrf.mxu1 }
 0x1e0   : > { %v4971_v24 = vadd.f32 %v2089_v56, %v1938_v38 }
 0x1e1   : > { %v1395_v23 = vpop.f32.mrf.mxu0 }
 0x1e2   : > { %v1396_v9 = vadd.f32 %v1395_v23, %v1291_v4  ;;  %2443 = vmatmul.f32.gmra.mxu2 %v5427_v50 }
 0x1e4   : > { %2534 = vmatmul.f32.gmra.mxu3 %v5427_v50  ;;  %2225 = vmatmul.f32.gmra.mxu0 %v4769_v0  ;;  %v4977_v40 = vadd.f32 %v1484_v1, %v1396_v9  ;;  %v5429_v9 = vld [vmem:[#allocation14_spill] sm:$0xff]  ;;  %v5431_v1 = vld [vmem:[#allocation20_spill] sm:$0xff] }
 0x1e5   : > { %v1946_v58 = vpop.f32.mrf.mxu2  ;;  %2348 = vmatmul.f32.gmra.mxu1 %v5428_v59 }
 0x1e7   : > { %v2093_v60 = vpop.f32.mrf.mxu3  ;;  %v2259_v56 = vpop.f32.mrf.mxu1 }
 0x1e8   : > { %v4981_v38 = vadd.f32 %v2093_v60, %v1946_v58  ;;  %v5433_v60 = vld [vmem:[#allocation26_spill] sm:$0xff] }
 0x1e9   : > { %v2151_v10 = vpop.f32.mrf.mxu0 }
 0x1ea   : > { %v2152_v46 = vadd.f32 %v2151_v10, %v4845_v18  ;;  %2447 = vmatmul.f32.gmra.mxu2 %v4690_v12  ;;  %v5430_v18 = vld [vmem:[#allocation18_spill] sm:$0xff] }
 0x1ec   : > { %2538 = vmatmul.f32.gmra.mxu3 %v4690_v12  ;;  %v4986_v4 = vadd.f32 %v2259_v56, %v2152_v46  ;;  %2589 = vmatmul.f32.vlgmr.msrb.gmra.mxu0 %v2588_v63  ;;  %v5435_v63 = vld [vmem:[#allocation29_spill] sm:$0xff]  ;;  %v5437_v46 = vld [vmem:[#allocation34_spill] sm:$0xff] }
 0x1ed   : > { %v1954_v23 = vpop.f32.mrf.mxu2  ;;  %2748 = vmatpush.msrb.mxu0 %v5429_v9  ;;  %2660 = vmatmul.f32.vlgmr.msrb.gmra.mxu1 %v4960_v52 }
 0x1ee   : > { %3127 = vmatpush.msk.msrb.mxu1 %vm4050_vm11, %v5323_v16 }
 0x1ef   : > { %v2097_v0 = vpop.f32.mrf.mxu3  ;;  %2752 = vmatpush.msrb.mxu0 %v5430_v18 }
 0x1f0   : > { %v4993_v50 = vadd.f32 %v2097_v0, %v1954_v23  ;;  %3128 = vmatpush.msk.msrb.mxu1 %vm4065_vm12, %v5323_v16  ;;  %v2265_v58 = vpop.f32.mrf.mxu1 }
 0x1f1   : > { %v2156_v12 = vpop.f32.mrf.mxu0  ;;  %2756 = vmatpush.msrb.mxu0 %v5431_v1 }
 0x1f2   : > { %v2157_v27 = vadd.f32 %v2156_v12, %v4856_v3  ;;  %2451 = vmatmul.f32.gmra.mxu2 %v4709_v11  ;;  %3129 = vmatpush.msk.msrb.mxu1 %vm4082_vm13, %v5323_v16 }
 0x1f3   : > { %2760 = vmatpush.msrb.mxu0 %v5432_v7  ;;  %v5442_v7 = vld [vmem:[#allocation21_spill] sm:$0xff] }
 0x1f4   : > { %2542 = vmatmul.f32.gmra.mxu3 %v4709_v11  ;;  %v2266_v59 = vadd.f32 %v2265_v58, %v2157_v27  ;;  %3130 = vmatpush.msk.msrb.mxu1 %vm4098_vm14, %v5323_v16  ;;  %v5434_v11 = vld [vmem:[#allocation28_spill] sm:$0xff]  ;;  %v5440_v27 = vld [vmem:[#allocation15_spill] sm:$0xff] }
 0x1f5   : > { %2702 = vmatmul.f32.vlgmr.msra.gmra.mxu0 %v2585_v37  ;;  %v1962_v13 = vpop.f32.mrf.mxu2  ;;  %2735 = vmatmul.f32.vlgmr.msra.gmra.mxu1 %v2586_v6 }
 0x1f6   : > { %2764 = vmatpush.msrb.mxu0 %v5433_v60  ;;  %3131 = vmatpush.msk.msrb.mxu1 %vm5305_vm7, %v5323_v16 }
 0x1f7   : > { %v2101_v3 = vpop.f32.mrf.mxu3 }
 0x1f8   : > { %v5014_v31 = vadd.f32 %v2101_v3, %v1962_v13  ;;  %2768 = vmatpush.msrb.mxu0 %v5434_v11  ;;  %3132 = vmatpush.msk.msrb.mxu1 %vm5310_vm9, %v5323_v16  ;;  %v5443_v11 = vld [vmem:[#allocation17_spill] sm:$0xff] }
 0x1f9   : > { %v2161_v41 = vpop.f32.mrf.mxu0 }
 0x1fa   : > { %2772 = vmatpush.msrb.mxu0 %v5435_v63  ;;  %v2162_v37 = vadd.f32 %v2161_v41, %v4867_v53  ;;  %2455 = vmatmul.f32.gmra.mxu2 %v4726_v8  ;;  %v2271_v6 = vpop.f32.mrf.mxu1  ;;  %v5444_v63 = vld [vmem:[#allocation23_spill] sm:$0xff] }
 0x1fb   : > { %3133 = vmatpush.msk.msrb.mxu1 %vm5311_vm10, %v5323_v16 }
 0x1fc   : > { %2546 = vmatmul.f32.gmra.mxu3 %v4726_v8  ;;  %2776 = vmatpush.msrb.mxu0 %v5436_v25  ;;  %v2272_v10 = vadd.f32 %v2271_v6, %v2162_v37 }
 0x1fd   : > { %3134 = vmatpush.msk.msrb.mxu1 %vm4159_vm0, %v5323_v16  ;;  %v1970_v43 = vpop.f32.mrf.mxu2 }
 0x1fe   : > { %2780 = vmatpush.msrb.mxu0 %v5437_v46  ;;  %v5446_v46 = vld [vmem:[#allocation25_spill] sm:$0xff] }
 0x1ff   : > { %v2105_v53 = vpop.f32.mrf.mxu3  ;;  %3135 = vmatpush.msk.msrb.mxu1 %vm4178_vm1, %v5323_v16 }
 0x200   : > { %v5035_v56 = vadd.f32 %v2105_v53, %v1970_v43  ;;  %2784 = vmatpush.msrb.mxu0 %v5438_v44  ;;  %v5445_v43 = vld [vmem:[#allocation19_spill] sm:$0xff]  ;;  %v5447_v44 = vld [vmem:[#allocation30_spill] sm:$0xff] }
 0x201   : > { %2786 = vmatmul.f32.vlgmr.msrb.gmra.mxu0 %v4960_v52  ;;  %3136 = vmatpush.msk.msrb.mxu1 %vm4193_vm2, %v5323_v16  ;;  %v2166_v45 = vpop.f32.mrf.mxu0  ;;  %v5439_v16 = vld [vmem:[#allocation16_spill] sm:$0xff] }
 0x202   : > { %2817 = vmatmul.f32.vlgmr.msrb.gmra.mxu1 %v4960_v52  ;;  %v2167_v8 = vadd.f32 %v2166_v45, %v4878_v35  ;;  %2459 = vmatmul.f32.gmra.mxu2 %v4749_v57  ;;  %v2277_v23 = vpop.f32.mrf.mxu1  ;;  %v997_v58 = vadd.f32 %v5440_v27, %v5439_v16  ;;  %v5441_v52 = vld [vmem:[#allocation22_spill] sm:$0xff]  ;;  %v5448_v45 = vld [vmem:[#allocation27_spill] sm:$0xff] }
 0x203   : > { %v1001_v35 = vadd.f32 %v5442_v7, %v5441_v52  ;;  %v5450_v16 = vld [vmem:[#allocation31_spill] sm:$0xff] }
 0x204   : > { %2550 = vmatmul.f32.gmra.mxu3 %v4749_v57  ;;  %v2278_v61 = vadd.f32 %v2277_v23, %v2167_v8  ;;  %v1095_v41 = vadd.f32 %v5443_v11, %v997_v58  ;;  %v1005_v8 = vadd.f32 %v5448_v45, %v5447_v44  ;;  %v5451_v58 = vld [vmem:[#allocation84_spill] sm:$0xff]  ;;  %v5455_v44 = vld [vmem:[#allocation38_spill] sm:$0xff] }
 0x205   : > { %v1978_v9 = vpop.f32.mrf.mxu2  ;;  %v1100_v37 = vadd.f32 %v5444_v63, %v1001_v35  ;;  %v5454_v63 = vld [vmem:[#allocation36_spill] sm:$0xff] }
 0x206   : > { %v1105_v27 = vadd.f32 %v5450_v16, %v1005_v8 }
 0x207   : > { %v2109_v0 = vpop.f32.mrf.mxu3  ;;  %v1207_v53 = vadd.f32 %v5446_v46, %v1100_v37 }
 0x208   : > { %v5046_v18 = vadd.f32 %v2109_v0, %v1978_v9  ;;  %v5449_v9 = vld [vmem:[#allocation85_spill] sm:$0xff] }
 0x209   : > { %v2171_v12 = vpop.f32.mrf.mxu0 }
 0x20a   : > { %v2172_v1 = vadd.f32 %v2171_v12, %v4889_v26  ;;  %v2283_v47 = vpop.f32.mrf.mxu1  ;;  %v1201_v26 = vadd.f32 %v5445_v43, %v1095_v41  ;;  %v1340_v12 = vadd.f32 %v4762_v22, %v1207_v53  ;;  %v5453_v41 = vld [vmem:[#allocation37_spill] sm:$0xff] }
 0x20b   : > { %v1009_v37 = vadd.f32 %v5454_v63, %v5453_v41  ;;  %v5461_v63 = vld [vmem:[#allocation45_spill] sm:$0xff] }
 0x20c   : > { %v2284_v13 = vadd.f32 %v2283_v47, %v2172_v1  ;;  %v1336_v0 = vadd.f32 %v5449_v9, %v1201_v26  ;;  %v1429_v7 = vadd.f32 %v4754_v32, %v1340_v12  ;;  %v5456_v9 = vld [vmem:[#allocation39_spill] sm:$0xff]  ;;  %v5457_v12 = vld [vmem:[#allocation41_spill] sm:$0xff] }
 0x20d   : > { %v2400_v60 = vpop.f32.mrf.mxu2  ;;  %v1110_v45 = vadd.f32 %v5455_v44, %v1009_v37  ;;  %v5462_v37 = vld [vmem:[#allocation44_spill] sm:$0xff] }
 0x20e   : > { %v2401_v3 = vadd.f32 %v2400_v60, %v4986_v4  ;;  %v1425_v52 = vadd.f32 %v5451_v58, %v1336_v0 }
 0x20f   : > { %v2491_v57 = vpop.f32.mrf.mxu3  ;;  %v1219_v0 = vadd.f32 %v5456_v9, %v1110_v45  ;;  %v5464_v9 = vld [vmem:[#allocation47_spill] sm:$0xff] }
 0x210   : > { %v2492_v6 = vadd.f32 %v2491_v57, %v2401_v3  ;;  %v5452_v57 = vld [vmem:[#allocation33_spill] sm:$0xff] }
 0x211   : > { %v2176_v25 = vpop.f32.mrf.mxu0  ;;  %v1213_v11 = vadd.f32 %v5452_v57, %v1105_v27  ;;  %v1348_v58 = vadd.f32 %v4826_v39, %v1219_v0 }
 0x212   : > { %v2289_v47 = vpop.f32.mrf.mxu1  ;;  %v2821_v60 = vmul.f32 %v2492_v6, %v1425_v52 }
 0x215   : > { %v2404_v23 = vpop.f32.mrf.mxu2 }
 0x216   : > { %v2405_v4 = vadd.f32 %v2404_v23, %v2266_v59  ;;  %v1344_v59 = vadd.f32 %v4795_v5, %v1213_v11  ;;  %v5460_v11 = vld [vmem:[#allocation43_spill] sm:$0xff] }
 0x217   : > { %v2495_v1 = vpop.f32.mrf.mxu3 }
 0x218   : > { %v2496_v35 = vadd.f32 %v2495_v1, %v2405_v4  ;;  %v1433_v8 = vadd.f32 %v4790_v42, %v1344_v59  ;;  %v5458_v4 = vld [vmem:[#allocation40_spill] sm:$0xff] }
 0x219   : > { %v2181_v26 = vpop.f32.mrf.mxu0  ;;  %v1013_v1 = vadd.f32 %v5458_v4, %v5457_v12  ;;  %v5465_v12 = vld [vmem:[#allocation49_spill] sm:$0xff]  ;;  %v5466_v4 = vld [vmem:[#allocation48_spill] sm:$0xff] }
 0x21a   : > { %v2822_v3 = vmul.f32 %v2496_v35, %v1429_v7  ;;  %v2295_v23 = vpop.f32.mrf.mxu1  ;;  %v5459_v7 = vld [vmem:[#allocation42_spill] sm:$0xff] }
 0x21b   : > { %v1115_v35 = vadd.f32 %v5459_v7, %v1013_v1  ;;  %v1021_v1 = vadd.f32 %v5466_v4, %v5465_v12  ;;  %v5467_v7 = vld [vmem:[#allocation50_spill] sm:$0xff] }
 0x21c   : > { %v2837_v43 = vadd.f32 %v2822_v3, %v2821_v60  ;;  %v1437_v60 = vadd.f32 %v4821_v20, %v1348_v58 }
 0x21d   : > { %v2408_v22 = vpop.f32.mrf.mxu2  ;;  %v1225_v41 = vadd.f32 %v5460_v11, %v1115_v35 }
 0x21e   : > { %v2409_v46 = vadd.f32 %v2408_v22, %v2272_v10  ;;  %v1017_v22 = vadd.f32 %v5462_v37, %v5461_v63 }
 0x21f   : > { %v2499_v53 = vpop.f32.mrf.mxu3 }
 0x220   : > { %v2500_v32 = vadd.f32 %v2499_v53, %v2409_v46  ;;  %v1352_v46 = vadd.f32 %v4836_v54, %v1225_v41  ;;  %v5463_v53 = vld [vmem:[#allocation46_spill] sm:$0xff]  ;;  %v5469_v41 = vld [vmem:[#allocation53_spill] sm:$0xff] }
 0x221   : > { %v2186_v10 = vpop.f32.mrf.mxu0  ;;  %v1120_v44 = vadd.f32 %v5463_v53, %v1017_v22 }
 0x222   : > { %v2823_v6 = vmul.f32 %v2500_v32, %v1433_v8  ;;  %v2301_v57 = vpop.f32.mrf.mxu1  ;;  %v1441_v45 = vadd.f32 %v4839_v33, %v1352_v46  ;;  %v2177_v32 = vadd.f32 %v2176_v25, %v4900_v62  ;;  %v1125_v33 = vadd.f32 %v5467_v7, %v1021_v1 }
 0x223   : > { %v1231_v0 = vadd.f32 %v5464_v9, %v1120_v44  ;;  %v2182_v62 = vadd.f32 %v2181_v26, %v4914_v28  ;;  %v2187_v26 = vadd.f32 %v2186_v10, %v4927_v15 }
 0x224   : > { %v2838_v16 = vadd.f32 %v2837_v43, %v2823_v6 }
 0x225   : > { %v2412_v27 = vpop.f32.mrf.mxu2  ;;  %v2296_v37 = vadd.f32 %v2295_v23, %v2182_v62  ;;  %v2302_v9 = vadd.f32 %v2301_v57, %v2187_v26  ;;  %v5478_v57 = vld [vmem:[#allocation60_spill] sm:$0xff] }
 0x226   : > { %v2413_v52 = vadd.f32 %v2412_v27, %v2278_v61 }
 0x227   : > { %v2503_v5 = vpop.f32.mrf.mxu3 }
 0x228   : > { %v2504_v42 = vadd.f32 %v2503_v5, %v2413_v52 }
 0x229   : > { %v2191_v20 = vpop.f32.mrf.mxu0 }
 0x22a   : > { %v2824_v3 = vmul.f32 %v2504_v42, %v1437_v60  ;;  %v2307_v58 = vpop.f32.mrf.mxu1  ;;  %v2192_v10 = vadd.f32 %v2191_v20, %v4940_v29 }
 0x22c   : > { %v2839_v59 = vadd.f32 %v2838_v16, %v2824_v3  ;;  %v2290_v16 = vadd.f32 %v2289_v47, %v2177_v32  ;;  %v5468_v3 = vld [vmem:[#allocation51_spill] sm:$0xff]  ;;  %v5470_v47 = vld [vmem:[#allocation52_spill] sm:$0xff]  ;;  %v5473_v32 = vld [vmem:[#allocation57_spill] sm:$0xff] }
 0x22d   : > { %v2416_v43 = vpop.f32.mrf.mxu2  ;;  %v1237_v11 = vadd.f32 %v5468_v3, %v1125_v33  ;;  %v1025_v63 = vadd.f32 %v5470_v47, %v5469_v41  ;;  %v5477_v33 = vld [vmem:[#allocation62_spill] sm:$0xff]  ;;  %v5479_v47 = vld [vmem:[#allocation63_spill] sm:$0xff] }
 0x22e   : > { %v2417_v39 = vadd.f32 %v2416_v43, %v2284_v13  ;;  %v1356_v13 = vadd.f32 %v4847_v36, %v1231_v0 }
 0x22f   : > { %v2507_v61 = vpop.f32.mrf.mxu3  ;;  %v1360_v36 = vadd.f32 %v4858_v34, %v1237_v11 }
 0x230   : > { %v2508_v8 = vadd.f32 %v2507_v61, %v2417_v39  ;;  %v1445_v35 = vadd.f32 %v4850_v49, %v1356_v13  ;;  %v5471_v61 = vld [vmem:[#allocation54_spill] sm:$0xff] }
 0x231   : > { %v2196_v42 = vpop.f32.mrf.mxu0  ;;  %v1130_v49 = vadd.f32 %v5471_v61, %v1025_v63  ;;  %v1449_v53 = vadd.f32 %v4861_v17, %v1360_v36 }
 0x232   : > { %v2825_v6 = vmul.f32 %v2508_v8, %v1441_v45  ;;  %v2313_v39 = vpop.f32.mrf.mxu1  ;;  %v5472_v45 = vld [vmem:[#allocation55_spill] sm:$0xff]  ;;  %v2197_v29 = vadd.f32 %v2196_v42, %v4955_v48 }
 0x233   : > { %v1243_v8 = vadd.f32 %v5472_v45, %v1130_v49 }
 0x234   : > { %v2840_v27 = vadd.f32 %v2839_v59, %v2825_v6  ;;  %v5474_v6 = vld [vmem:[#allocation56_spill] sm:$0xff]  ;;  %v2314_v61 = vadd.f32 %v2313_v39, %v2197_v29 }
 0x235   : > { %v2420_v54 = vpop.f32.mrf.mxu2  ;;  %v1029_v23 = vadd.f32 %v5474_v6, %v5473_v32  ;;  %v1364_v4 = vadd.f32 %v4869_v55, %v1243_v8  ;;  %v5489_v29 = vld [vmem:[#allocation72_spill] sm:$0xff] }
 0x236   : > { %v2421_v52 = vadd.f32 %v2420_v54, %v2290_v16 }
 0x237   : > { %v2511_v5 = vpop.f32.mrf.mxu3  ;;  %v1453_v17 = vadd.f32 %v4872_v21, %v1364_v4 }
 0x238   : > { %v2512_v60 = vadd.f32 %v2511_v5, %v2421_v52  ;;  %v5476_v5 = vld [vmem:[#allocation59_spill] sm:$0xff] }
 0x239   : > { %v2201_v12 = vpop.f32.mrf.mxu0 }
 0x23a   : > { %v2826_v25 = vmul.f32 %v2512_v60, %v1445_v35  ;;  %v2319_v15 = vpop.f32.mrf.mxu1  ;;  %v1033_v35 = vadd.f32 %v5478_v57, %v5477_v33  ;;  %v2308_v60 = vadd.f32 %v2307_v58, %v2192_v10  ;;  %v5482_v58 = vld [vmem:[#allocation65_spill] sm:$0xff]  ;;  %v2202_v42 = vadd.f32 %v2201_v12, %v4971_v24 }
 0x23c   : > { %v2841_v22 = vadd.f32 %v2840_v27, %v2826_v25  ;;  %v5475_v27 = vld [vmem:[#allocation58_spill] sm:$0xff]  ;;  %v1140_v21 = vadd.f32 %v5479_v47, %v1033_v35 }
 0x23d   : > { %v2424_v59 = vpop.f32.mrf.mxu2  ;;  %v1135_v54 = vadd.f32 %v5475_v27, %v1029_v23  ;;  %v5485_v23 = vld [vmem:[#allocation69_spill] sm:$0xff] }
 0x23e   : > { %v2425_v43 = vadd.f32 %v2424_v59, %v2296_v37  ;;  %v5480_v59 = vld [vmem:[#allocation64_spill] sm:$0xff] }
 0x23f   : > { %v2515_v46 = vpop.f32.mrf.mxu3  ;;  %v1249_v7 = vadd.f32 %v5476_v5, %v1135_v54  ;;  %v1255_v36 = vadd.f32 %v5480_v59, %v1140_v21  ;;  %v5487_v54 = vld [vmem:[#allocation94_spill] sm:$0xff] }
 0x240   : > { %v2516_v28 = vadd.f32 %v2515_v46, %v2425_v43  ;;  %v5481_v43 = vld [vmem:[#allocation67_spill] sm:$0xff] }
 0x241   : > { %v1368_v55 = vadd.f32 %v4880_v19, %v1249_v7  ;;  %v2206_v41 = vpop.f32.mrf.mxu0  ;;  %v1037_v46 = vadd.f32 %v5482_v58, %v5481_v43 }
 0x242   : > { %v2827_v44 = vmul.f32 %v2516_v28, %v1449_v53  ;;  %v1372_v53 = vadd.f32 %v4891_v51, %v1255_v36  ;;  %v2207_v10 = vadd.f32 %v2206_v41, %v4981_v38 }
 0x243   : > { %v1457_v63 = vadd.f32 %v4883_v14, %v1368_v55  ;;  %v5484_v14 = vld [vmem:[#allocation92_spill] sm:$0xff] }
 0x244   : > { %v2842_v0 = vadd.f32 %v2841_v22, %v2827_v44  ;;  %v2325_v22 = vpop.f32.mrf.mxu1  ;;  %v5483_v44 = vld [vmem:[#allocation68_spill] sm:$0xff]  ;;  %v1461_v8 = vadd.f32 %v5484_v14, %v1372_v53 }
 0x245   : > { %v2428_v34 = vpop.f32.mrf.mxu2  ;;  %v1145_v45 = vadd.f32 %v5483_v44, %v1037_v46  ;;  %v2326_v7 = vadd.f32 %v2325_v22, %v2207_v10  ;;  %v5493_v10 = vld [vmem:[#allocation89_spill] sm:$0xff] }
 0x246   : > { %v2429_v1 = vadd.f32 %v2428_v34, %v2302_v9 }
 0x247   : > { %v2519_v16 = vpop.f32.mrf.mxu3  ;;  %v1261_v9 = vadd.f32 %v5485_v23, %v1145_v45 }
 0x248   : > { %v2520_v13 = vadd.f32 %v2519_v16, %v2429_v1  ;;  %v5486_v1 = vld [vmem:[#allocation93_spill] sm:$0xff] }
 0x249   : > { %v2211_v48 = vpop.f32.mrf.mxu0  ;;  %v1376_v16 = vadd.f32 %v5486_v1, %v1261_v9  ;;  %v5491_v1 = vld [vmem:[#allocation87_spill] sm:$0xff] }
 0x24a   : > { %v2828_v52 = vmul.f32 %v2520_v13, %v1453_v17 }
 0x24b   : > { %v1465_v17 = vadd.f32 %v5487_v54, %v1376_v16 }
 0x24c   : > { %v2843_v62 = vadd.f32 %v2842_v0, %v2828_v52  ;;  %v2320_v0 = vadd.f32 %v2319_v15, %v2202_v42  ;;  %v2331_v39 = vpop.f32.mrf.mxu1 }
 0x24d   : > { %v2432_v25 = vpop.f32.mrf.mxu2 }
 0x24e   : > { %v2433_v3 = vadd.f32 %v2432_v25, %v2308_v60  ;;  %v2212_v60 = vadd.f32 %v2211_v48, %v4993_v50 }
 0x24f   : > { %v2523_v11 = vpop.f32.mrf.mxu3 }
 0x250   : > { %v2524_v37 = vadd.f32 %v2523_v11, %v2433_v3  ;;  %v2332_v55 = vadd.f32 %v2331_v39, %v2212_v60  ;;  %v5495_v60 = vld [vmem:[#allocation91_spill] sm:$0xff] }
 0x251   : > { %v2216_v5 = vpop.f32.mrf.mxu0 }
 0x252   : > { %v2829_v20 = vmul.f32 %v2524_v37, %v1457_v63  ;;  %v2217_v37 = vadd.f32 %v2216_v5, %v5014_v31 }
 0x254   : > { %v2844_v49 = vadd.f32 %v2843_v62, %v2829_v20  ;;  %v2337_v15 = vpop.f32.mrf.mxu1  ;;  %v5488_v62 = vld [vmem:[#allocation61_spill] sm:$0xff] }
 0x255   : > { %v2436_v19 = vpop.f32.mrf.mxu2  ;;  %v2338_v22 = vadd.f32 %v2337_v15, %v2217_v37 }
 0x256   : > { %v2437_v28 = vadd.f32 %v2436_v19, %v2314_v61 }
 0x257   : > { %v2527_v26 = vpop.f32.mrf.mxu3 }
 0x258   : > { %v2528_v32 = vadd.f32 %v2527_v26, %v2437_v28 }
 0x259   : > { %v2221_v11 = vpop.f32.mrf.mxu0 }
 0x25a   : > { %v2830_v6 = vmul.f32 %v2528_v32, %v1461_v8  ;;  %v2222_v61 = vadd.f32 %v2221_v11, %v5035_v56  ;;  %v2861_v11 = vstv %s2860_s15 }
 0x25c   : > { %v2845_v34 = vadd.f32 %v2844_v49, %v2830_v6  ;;  %v2343_v41 = vpop.f32.mrf.mxu1 }
 0x25d   : > { %v2440_v4 = vpop.f32.mrf.mxu2  ;;  %v2344_v53 = vadd.f32 %v2343_v41, %v2222_v61 }
 0x25e   : > { %v2441_v51 = vadd.f32 %v2440_v4, %v2320_v0  ;;  %v5490_v4 = vld [vmem:[#allocation86_spill] sm:$0xff] }
 0x25f   : > { %v2531_v27 = vpop.f32.mrf.mxu3  ;;  %v1583_v16 = vadd.f32 %v5491_v1, %v5490_v4 }
 0x260   : > { %v2532_v13 = vadd.f32 %v2531_v27, %v2441_v51 }
 0x261   : > { %v2226_v50 = vpop.f32.mrf.mxu0 }
 0x262   : > { %v2831_v52 = vmul.f32 %v2532_v13, %v1465_v17  ;;  %v2227_v8 = vadd.f32 %v2226_v50, %v5046_v18  ;;  %v5492_v18 = vld [vmem:[#allocation88_spill] sm:$0xff] }
 0x263   : > { %v1621_v54 = vadd.f32 %v5492_v18, %v1583_v16 }
 0x264   : > { %v2846_v24 = vadd.f32 %v2845_v34, %v2831_v52  ;;  %v2349_v19 = vpop.f32.mrf.mxu1 }
 0x265   : > { %v2444_v12 = vpop.f32.mrf.mxu2  ;;  %v2350_v42 = vadd.f32 %v2349_v19, %v2227_v8  ;;  %v1652_v52 = vadd.f32 %v5493_v10, %v1621_v54 }
 0x266   : > { %v2445_v33 = vadd.f32 %v2444_v12, %v2326_v7  ;;  %v5494_v12 = vld [vmem:[#allocation90_spill] sm:$0xff] }
 0x267   : > { %v2535_v57 = vpop.f32.mrf.mxu3 }
 0x268   : > { %v2536_v35 = vadd.f32 %v2535_v57, %v2445_v33 }
 0x269   : > { %v2590_v31 = vpop.f32.mrf.mxu0 }
 0x26a   : > { %v2832_v25 = vmul.f32 %v2536_v35, %v5488_v62 }
 0x26c   : > { %v2847_v3 = vadd.f32 %v2846_v24, %v2832_v25  ;;  %v2661_v48 = vpop.f32.mrf.mxu1 }
 0x26d   : > { %v2448_v47 = vpop.f32.mrf.mxu2  ;;  %v2662_v34 = vadd.f32 %v2661_v48, %v2590_v31 }
 0x26e   : > { %v2449_v21 = vadd.f32 %v2448_v47, %v2332_v55 }
 0x26f   : > { %v2539_v63 = vpop.f32.mrf.mxu3 }
 0x270   : > { %v2540_v38 = vadd.f32 %v2539_v63, %v2449_v21 }
 0x272   : > { %v2833_v20 = vmul.f32 %v2540_v38, %v5489_v29  ;;  %v2703_v0 = vpop.f32.mrf.mxu0 }
 0x274   : > { %v2848_v59 = vadd.f32 %v2847_v3, %v2833_v20  ;;  %v2736_v27 = vpop.f32.mrf.mxu1 }
 0x275   : > { %v2452_v36 = vpop.f32.mrf.mxu2 }
 0x276   : > { %v2453_v43 = vadd.f32 %v2452_v36, %v2338_v22 }
 0x277   : > { %v2543_v58 = vpop.f32.mrf.mxu3 }
 0x278   : > { %v2544_v46 = vadd.f32 %v2543_v58, %v2453_v43 }
 0x27a   : > { %v2834_v49 = vmul.f32 %v2544_v46, %v4950_v2 }
 0x27c   : > { %v2849_v28 = vadd.f32 %v2848_v59, %v2834_v49 }
 0x27d   : > { %v2456_v26 = vpop.f32.mrf.mxu2 }
 0x27e   : > { %v2457_v44 = vadd.f32 %v2456_v26, %v2344_v53  ;;  %v2787_v24 = vpop.f32.mrf.mxu0 }
 0x27f   : > { %v2547_v45 = vpop.f32.mrf.mxu3  ;;  %v2818_v35 = vpop.f32.mrf.mxu1 }
 0x280   : > { %v2548_v14 = vadd.f32 %v2547_v45, %v2457_v44 }
 0x282   : > { %v2835_v32 = vmul.f32 %v2548_v14, %v4966_v30  ;;  %v2704_v30 = vadd.f32 %v2703_v0, %v2662_v34 }
 0x284   : > { %v2850_v6 = vadd.f32 %v2849_v28, %v2835_v32  ;;  %v2737_v5 = vadd.f32 %v2736_v27, %v2704_v30 }
 0x285   : > { %v2460_v23 = vpop.f32.mrf.mxu2 }
 0x286   : > { %v2461_v9 = vadd.f32 %v2460_v23, %v2350_v42  ;;  %v2788_v57 = vadd.f32 %v2787_v24, %v2737_v5 }
 0x287   : > { %v2551_v56 = vpop.f32.mrf.mxu3 }
 0x288   : > { %v2552_v2 = vadd.f32 %v2551_v56, %v2461_v9  ;;  %v2819_v55 = vadd.f32 %v2818_v35, %v2788_v57 }
 0x28a   : > { %v2836_v39 = vmul.f32 %v2552_v2, %v4977_v40  ;;  %v1697_v40 = vadd.f32 %v5494_v12, %v1652_v52 }
 0x28c   : > { %v2851_v51 = vadd.f32 %v2850_v6, %v2836_v39  ;;  %v1726_v62 = vadd.f32 %v5495_v60, %v1697_v40 }
 0x28e   : > { %v2852_v17 = vrot.slane %v2851_v51, 4 }
 0x290   : > { %v2853_v13 = vadd.f32 %v2852_v17, %v2851_v51 }
 0x292   : > { %v2854_v7 = vrot.slane %v2853_v13, 2 }
 0x294   : > { %v2855_v33 = vadd.f32 %v2854_v7, %v2853_v13 }
 0x296   : > { %v2856_v15 = vrot.slane %v2855_v33, 1 }
 0x298   : > { %v2857_v25 = vadd.f32 %v2856_v15, %v2855_v33 }
 0x29a   : > { %v2858_v3 = vadd.f32 %v2857_v25, %v1726_v62 }
 0x29c   : > { %v2859_v47 = vadd.f32 %v2858_v3, %v2819_v55 }
 0x29e   : > { %v2862_v21 = vadd.f32 %v2861_v11, %v2859_v47 }
 0x2a0   : > { %2863 = vst [vmem:[%s3498_s14] sm:$0x1] %v2862_v21 }
 0x2a1   : > { %3315 = shalt.err (!%p3312_p10)
}
 0x2a2   : > { %3223 = dma.vmem_to_hbm [thread:$0]  (%p3447_p5), %s2876_s20, 16, %s2878_s22, %s2865_s23  }
 0x2a3 PF: > { %p3235_p11 = scmp.ge.s32.totalorder %s3354_s12, 2  ;;  %s2889_s11 = sand.u32 1, %s3342_s30  }
 0x2a4   : > { %s2890_s18 = scalar_lea.sflag [#allocation5], %s2889_s11 }
 0x2a5   : > { %p3230_p12 = pnand %p3235_p11, %p3451_p6 }
 0x2a7   : > { %p3231_p13 = pneg %p3230_p12 }
 0x2a9   : > { %3337 = dma.done.wait (%p3231_p13), %s2890_s18, 16  }
 0x2aa   : > { %3339 = vsyncadd (%p3231_p13), %s2890_s18, 4294967280  ;;  %s5498_s12 = sld [smem:[#allocation11_spill]]  ;;  %s5501_s30 = smov %s3346_s10 }
 0x2ab   : > { %s5499_s15 = sld [smem:[#allocation10_spill]] }
 0x2ac   : > { %s5500_s11 = sld [smem:[#allocation12_spill]] }
 0x2b0   : > { %p20_p0 = scmp.ge.s32.totalorder %s5498_s12, 5  }
 0x2b1   : > { %s5502_s10 = smov %s5499_s15 }
 0x2b2   :  { %22 = sbr.rel (!%p20_p0) target bundleno = 6 (0x6), region = 115 }
 0x2b7   :  { %2895 = vsyncpa [#allocation5], 1 }
 0x2b8   :  { %2897 = vsyncpa [#allocation5 + $0x1], 1 }
 0x2b9   :  { %2898 = vsyncpa [#allocation6], 1 }
 0x2ba   :  { %2900 = vsyncpa [#allocation6 + $0x1], 1 }

</bundles_post_ra>
